<compile_context>
chip_gen: v6e
topology: v6e:2x2x1
jax: 0.10.0
libtpu: 0.0.40
codegen_flags: <defaults>
</compile_context>

<pallas_src>
import functools
import math

import jax
import jax.numpy as jnp
from jax.experimental import pallas as pl
from jax.experimental.pallas import tpu as pltpu  # noqa: F401  (TPU target)

D_MODEL = 32
NHEAD = 4
DH = D_MODEL // NHEAD
DIM_FF = 64
NUM_LAYERS = 2
BATCH = 2
SEQ = 8
LN_EPS = 1e-5
LANES = 128
_NEG_INF = -1e30


# ------------------------------------------------------------------ GELU probe
def _erf_lowers_on_tpu() -> bool:
    """Trace/compile-time probe (no device execution): does lax.erf lower?"""
    def k(x_ref, o_ref):
        o_ref[...] = jax.lax.erf(x_ref[...])

    f = pl.pallas_call(k, out_shape=jax.ShapeDtypeStruct((8, 128), jnp.float32))
    try:
        # Single-op kernel: the only realistic failure here is the erf lowering
        # (lower + AOT compile, never executed).
        jax.jit(f).lower(jax.ShapeDtypeStruct((8, 128), jnp.float32)).compile()
        return True
    except Exception:
        return False


_EXACT_GELU = _erf_lowers_on_tpu()


def _gelu(x):
    if _EXACT_GELU:
        # exact erf-based GELU == PyTorch nn.GELU() default (approximate='none')
        return 0.5 * x * (1.0 + jax.lax.erf(x * (1.0 / math.sqrt(2.0))))
    # TODO(synk): lax.erf has no Mosaic lowering on this jax build; falling back
    # to the tanh-approximate GELU (PyTorch default is the exact erf form).
    return jax.nn.gelu(x, approximate=True)


# -------------------------------------------------------------- slab layout
def _round8(n):
    return (n + 7) & ~7


def _slab_layout(batch, seq):
    """Row map of the single (rows, 128) f32 parameter/constant slab.

    Every block starts on an 8-row (sublane tile) boundary so in-kernel static
    ref slices stay tile-aligned.
    """
    d, ff = D_MODEL, DIM_FF
    n1 = batch * seq
    per = {}
    cur = 0
    for name, nr, nc in (('wqkv', d, 3 * d), ('wo', d, d), ('w1', d, ff),
                         ('w2', ff, d), ('vecs', 8, LANES)):
        per[name] = (cur, nr, nc)
        cur += _round8(nr)
    layer_rows = _round8(cur)

    glob = {}
    cur = NUM_LAYERS * layer_rows
    for name, nr, nc in (('norms', 8, LANES),          # norm_g, norm_b, out_g, out_b
                         ('pe', n1, d),                # positional encoding, batch-tiled
                         ('m1', NHEAD * n1, d),        # head lane masks, pass 1
                         ('m2', NHEAD * batch, d),     # head lane masks, pass 2
                         ('am', NHEAD * n1, n1)):      # additive block-diag mask, pass 1
        glob[name] = (cur, nr, nc)
        cur += _round8(nr)
    return dict(per=per, glob=glob, layer_rows=layer_rows, total_rows=_round8(cur))


# ----------------------------------------------------------- fused Pallas kernel
def _fused_forward_kernel(x_ref, w_ref, feats_ref, raw_ref, *, batch, seq):
    d, ff = D_MODEL, DIM_FF
    n1 = batch * seq
    lay = _slab_layout(batch, seq)
    per, glob, lrows = lay['per'], lay['glob'], lay['layer_rows']

    def gread(name):
        r, nr, nc = glob[name]
        return w_ref[r:r + nr, 0:nc]

    def layernorm(x, g, b):
        mu = jnp.mean(x, axis=-1, keepdims=True)
        xc = x - mu
        var = jnp.mean(xc * xc, axis=-1, keepdims=True)
        return xc * jax.lax.rsqrt(var + LN_EPS) * g + b

    def softmax_rows(s):
        m = jnp.max(s, axis=-1, keepdims=True)
        e = jnp.exp(s - m)
        # divide -> EUP reciprocal (otherwise-idle slot)
        return e * pl.reciprocal(jnp.sum(e, axis=-1, keepdims=True), approx=True)

    def encoder_layer(x, l, n, head_mask, attn_bias):
        """Pre-norm encoder layer; x is (n, d), all heads batched via sublanes."""
        base = l * lrows

        def lread(name):
            r, nr, nc = per[name]
            return w_ref[base + r: base + r + nr, 0:nc]

        wqkv, wo, w1, w2 = lread('wqkv'), lread('wo'), lread('w1'), lread('w2')
        vr = per['vecs'][0]
        vecs = w_ref[base + vr: base + vr + 8, :]                 # (8, 128)
        bqkv = vecs[0:1, 0:3 * d]
        bf1 = vecs[1:2, 0:ff]
        bo, g1, be1, g2, be2, bf2 = (vecs[i:i + 1, 0:d] for i in range(2, 8))

        # ---- pre-norm multi-head self-attention (all heads at once) ----
        hx = layernorm(x, g1, be1)
        # fused QKV projection; 1/sqrt(DH) is pre-folded into the q columns
        qkv = jnp.dot(hx, wqkv, preferred_element_type=jnp.float32) + bqkv  # (n, 3d)
        q, k, v = qkv[:, 0:d], qkv[:, d:2 * d], qkv[:, 2 * d:3 * d]
        # Stack heads along sublanes: block h holds q with only head-h lanes live.
        q_stk = jnp.concatenate([q] * NHEAD, axis=0) * head_mask           # (H*n, d)
        sc = jax.lax.dot_general(q_stk, k, (((1,), (1,)), ((), ())),
                                 preferred_element_type=jnp.float32)       # (H*n, n)
        if attn_bias is not None:                  # precomputed 0/-1e30 additive bias
            sc = sc + attn_bias
        p = softmax_rows(sc)
        ctx = jnp.dot(p, v, preferred_element_type=jnp.float32) * head_mask  # (H*n, d)
        # Recombine per-head outputs: masked sum of the H sublane blocks.
        attn = ctx[0:n]
        for hd in range(1, NHEAD):
            attn = attn + ctx[hd * n:(hd + 1) * n]                           # (n, d)
        x = x + jnp.dot(attn, wo, preferred_element_type=jnp.float32) + bo
        # ---- pre-norm feed-forward ----
        h2 = layernorm(x, g2, be2)
        a = _gelu(jnp.dot(h2, w1, preferred_element_type=jnp.float32) + bf1)
        return x + jnp.dot(a, w2, preferred_element_type=jnp.float32) + bf2

    norms = gread('norms')                                   # (8, 128)
    norm_g, norm_b = norms[0:1, 0:d], norms[1:2, 0:d]
    out_g, out_b = norms[2:3, 0:d], norms[3:4, 0:d]
    pe = gread('pe')                                         # (n1, d)
    m1, m2, am = gread('m1'), gread('m2'), gread('am')

    def transformer(x, n, head_mask, attn_bias):
        for l in range(NUM_LAYERS):                          # static layer loop
            x = encoder_layer(x, l, n, head_mask, attn_bias)
        return layernorm(x, norm_g, norm_b)                  # nn.TransformerEncoder norm

    # ---- first pass: batch sequences stacked along sublanes as (B*S, d) ----
    # PyTorch PositionalEncoding mutates x in place and returns it, hence 2*(x+pe).
    x = 2.0 * (x_ref[...] + pe)
    t = transformer(x, n1, m1, am)                           # (n1, d)

    # last-token gather via static row slices (rows (b+1)*seq - 1 are constants)
    last = jnp.concatenate(
        [t[(b + 1) * seq - 1:(b + 1) * seq, :] for b in range(batch)], axis=0)  # (b, d)

    # ---- second pass: the 2-D (B, d) tensor is ONE unbatched sequence in
    # PyTorch, so attention mixes across the batch axis (no mask).
    raw_ref[...] = transformer(last, batch, m2, None).astype(raw_ref.dtype)
    feats_ref[...] = layernorm(last, out_g, out_b).astype(feats_ref.dtype)


# -------------------------------------------------------------------- wrappers
def positional_encoding(seq, d):
    pos = jnp.arange(seq, dtype=jnp.float32)[:, None]
    div = jnp.exp(jnp.arange(0, d, 2, dtype=jnp.float32) * (-math.log(10000.0) / d))
    pe = jnp.zeros((seq, d), jnp.float32)
    pe = pe.at[:, 0::2].set(jnp.sin(pos * div))
    pe = pe.at[:, 1::2].set(jnp.cos(pos * div))
    return pe                                                 # (seq, d)


def pack_params(params, batch=BATCH, seq=SEQ):
    """Pack all weights + constants into ONE lane-padded (rows, 128) f32 slab."""
    d, dh = D_MODEL, DH
    n1 = batch * seq
    lay = _slab_layout(batch, seq)
    per, glob, lrows = lay['per'], lay['glob'], lay['layer_rows']
    slab = jnp.zeros((lay['total_rows'], LANES), jnp.float32)

    def put(s, row, val):
        val = jnp.asarray(val, jnp.float32)
        return s.at[row:row + val.shape[0], 0:val.shape[1]].set(val)

    scale = 1.0 / math.sqrt(dh)                   # fold attention scale into Wq/bq
    for l, p in enumerate(params['layers']):
        base = l * lrows
        slab = put(slab, base + per['wqkv'][0],
                   jnp.concatenate([p['wq'] * scale, p['wk'], p['wv']], axis=1))
        slab = put(slab, base + per['wo'][0], p['wo'])
        slab = put(slab, base + per['w1'][0], p['w1'])
        slab = put(slab, base + per['w2'][0], p['w2'])
        vbase = base + per['vecs'][0]
        slab = put(slab, vbase + 0,
                   jnp.concatenate([p['bq'] * scale, p['bk'], p['bv']], axis=1))
        slab = put(slab, vbase + 1, p['bf1'])
        for i, name in enumerate(('bo', 'g1', 'be1', 'g2', 'be2', 'bf2')):
            slab = put(slab, vbase + 2 + i, p[name])

    nbase = glob['norms'][0]
    for i, name in enumerate(('norm_g', 'norm_b', 'out_g', 'out_b')):
        slab = put(slab, nbase + i, params[name])

    # positional encoding, tiled across the batch (stacked-sequence layout)
    slab = put(slab, glob['pe'][0], jnp.tile(positional_encoding(seq, d), (batch, 1)))

    # head lane masks: hm[h, d] = 1 iff lane d belongs to head h
    hm = (jnp.arange(d)[None, :] // dh == jnp.arange(NHEAD)[:, None]).astype(jnp.float32)
    slab = put(slab, glob['m1'][0], jnp.repeat(hm, n1, axis=0))      # (H*n1, d)
    slab = put(slab, glob['m2'][0], jnp.repeat(hm, batch, axis=0))   # (H*b, d)

    # additive block-diagonal mask bias (0 same-sequence, -1e30 cross-sequence),
    # pre-tiled over heads for the sublane-stacked score layout
    si = jnp.arange(n1) // seq
    am = jnp.where(si[:, None] == si[None, :], 0.0, _NEG_INF)        # (n1, n1)
    slab = put(slab, glob['am'][0], jnp.tile(am, (NHEAD, 1)))        # (H*n1, n1)
    return slab


def forward(x, slab):
    b, s, d = x.shape
    # Single fused pallas_call: no grid, everything resident in VMEM.
    feats, raw = pl.pallas_call(
        functools.partial(_fused_forward_kernel, batch=b, seq=s),
        out_shape=(jax.ShapeDtypeStruct((b, d), jnp.float32),
                   jax.ShapeDtypeStruct((b, d), jnp.float32)),
    )(x.reshape(b * s, d), slab)
    return {'features': feats, 'raw_features': raw}


# ------------------------------------------------------------------ parameters
def init_params(key):
    def dense(k, fan_in, shape):
        return jax.random.normal(k, shape, jnp.float32) / math.sqrt(fan_in)

    layers = []
    for l in range(NUM_LAYERS):
        ks = jax.random.split(jax.random.fold_in(key, l), 10)
        layers.append(dict(
            wq=dense(ks[0], D_MODEL, (D_MODEL, D_MODEL)),
            wk=dense(ks[1], D_MODEL, (D_MODEL, D_MODEL)),
            wv=dense(ks[2], D_MODEL, (D_MODEL, D_MODEL)),
            bq=0.02 * jax.random.normal(ks[3], (1, D_MODEL), jnp.float32),
            bk=0.02 * jax.random.normal(ks[4], (1, D_MODEL), jnp.float32),
            bv=0.02 * jax.random.normal(ks[5], (1, D_MODEL), jnp.float32),
            wo=dense(ks[6], D_MODEL, (D_MODEL, D_MODEL)),
            bo=jnp.zeros((1, D_MODEL), jnp.float32),
            g1=jnp.ones((1, D_MODEL), jnp.float32),
            be1=jnp.zeros((1, D_MODEL), jnp.float32),
            g2=jnp.ones((1, D_MODEL), jnp.float32),
            be2=jnp.zeros((1, D_MODEL), jnp.float32),
            w1=dense(ks[7], D_MODEL, (D_MODEL, DIM_FF)),
            bf1=0.02 * jax.random.normal(ks[8], (1, DIM_FF), jnp.float32),
            w2=dense(ks[9], DIM_FF, (DIM_FF, D_MODEL)),
            bf2=jnp.zeros((1, D_MODEL), jnp.float32),
        ))
    return dict(layers=layers,
                norm_g=jnp.ones((1, D_MODEL), jnp.float32),
                norm_b=jnp.zeros((1, D_MODEL), jnp.float32),
                out_g=jnp.ones((1, D_MODEL), jnp.float32),
                out_b=jnp.zeros((1, D_MODEL), jnp.float32))


# -------------------------------------------------------- pure-JAX reference
def _layernorm(x, g, b, eps=LN_EPS):
    mu = jnp.mean(x, axis=-1, keepdims=True)
    var = jnp.mean((x - mu) ** 2, axis=-1, keepdims=True)
    return (x - mu) * jax.lax.rsqrt(var + eps) * g + b


def _ref_encoder_layer(x, p):
    dh = D_MODEL // NHEAD
    mm = functools.partial(jnp.matmul, precision=jax.lax.Precision.HIGHEST)
    h = _layernorm(x, p['g1'], p['be1'])
    q = mm(h, p['wq']) + p['bq']
    k = mm(h, p['wk']) + p['bk']
    v = mm(h, p['wv']) + p['bv']
    bb, s, d = x.shape

    def split(t):
        return t.reshape(bb, s, NHEAD, dh).transpose(0, 2, 1, 3)

    qh, kh, vh = split(q), split(k), split(v)
    sc = jnp.einsum('bhqd,bhkd->bhqk', qh, kh,
                    precision=jax.lax.Precision.HIGHEST) / math.sqrt(dh)
    pr = jax.nn.softmax(sc, axis=-1)
    o = jnp.einsum('bhqk,bhkd->bhqd', pr, vh, precision=jax.lax.Precision.HIGHEST)
    o = o.transpose(0, 2, 1, 3).reshape(bb, s, d)
    x = x + mm(o, p['wo']) + p['bo']
    h2 = _layernorm(x, p['g2'], p['be2'])
    y = mm(_gelu(mm(h2, p['w1']) + p['bf1']), p['w2']) + p['bf2']
    return x + y


def _ref_transformer(x, params):
    for lp in params['layers']:
        x = _ref_encoder_layer(x, lp)
    return _layernorm(x, params['norm_g'], params['norm_b'])


def _ref_forward(x, params):
    s, d = x.shape[1], x.shape[2]
    x = 2.0 * (x + positional_encoding(s, d))
    t = _ref_transformer(x, params)
    last = t[:, -1, :]
    raw = _ref_transformer(last[None], params)[0]
    feats = _layernorm(last, params['out_g'], params['out_b'])
    return {'features': feats, 'raw_features': raw}


# ------------------------------------------------------------------------ main
if __name__ == "__main__":
    key = jax.random.PRNGKey(0)
    kx, kp = jax.random.split(key)
    x = jax.random.normal(kx, (BATCH, SEQ, D_MODEL), jnp.float32)
    params = init_params(kp)
    slab = pack_params(params, BATCH, SEQ)

    fwd = jax.jit(forward)
    out = jax.block_until_ready(fwd(x, slab))

    ref = _ref_forward(x, params)
    for name in ('features', 'raw_features'):
        diff = float(jnp.max(jnp.abs(out[name] - ref[name])))
        assert diff < 5e-3, (name, diff)

    assert out['features'].shape == (BATCH, D_MODEL)
    assert out['raw_features'].shape == (BATCH, D_MODEL)
    print("KERNEL_OK")
</pallas_src>

<mosaic_0001>
module attributes {stable_mosaic.version = 11 : i64} {
  func.func @_fused_forward_kernel(%arg0: memref<16x32xf32, #tpu.memory_space<vmem>>, %arg1: memref<496x128xf32, #tpu.memory_space<vmem>>, %arg2: memref<2x32xf32, #tpu.memory_space<vmem>>, %arg3: memref<2x32xf32, #tpu.memory_space<vmem>>) attributes {dimension_semantics = [], scalar_prefetch = 0 : i64, scratch_operands = 0 : i64, tpu.core_type = #tpu.core_type<tc>} {
    %c336 = arith.constant 336 : index
    %c0 = arith.constant 0 : index
    %0 = vector.load %arg1[%c336, %c0] : memref<496x128xf32, #tpu.memory_space<vmem>>, vector<8x128xf32>
    %1 = vector.extract_strided_slice %0 {offsets = [0, 0], sizes = [1, 32], strides = [1, 1]} : vector<8x128xf32> to vector<1x32xf32>
    %2 = vector.extract_strided_slice %0 {offsets = [1, 0], sizes = [1, 32], strides = [1, 1]} : vector<8x128xf32> to vector<1x32xf32>
    %3 = vector.extract_strided_slice %0 {offsets = [2, 0], sizes = [1, 32], strides = [1, 1]} : vector<8x128xf32> to vector<1x32xf32>
    %4 = vector.extract_strided_slice %0 {offsets = [3, 0], sizes = [1, 32], strides = [1, 1]} : vector<8x128xf32> to vector<1x32xf32>
    %c344 = arith.constant 344 : index
    %c0_0 = arith.constant 0 : index
    %5 = vector.load %arg1[%c344, %c0_0] : memref<496x128xf32, #tpu.memory_space<vmem>>, vector<16x32xf32>
    %c360 = arith.constant 360 : index
    %c0_1 = arith.constant 0 : index
    %6 = vector.load %arg1[%c360, %c0_1] : memref<496x128xf32, #tpu.memory_space<vmem>>, vector<64x32xf32>
    %c424 = arith.constant 424 : index
    %c0_2 = arith.constant 0 : index
    %7 = vector.load %arg1[%c424, %c0_2] : memref<496x128xf32, #tpu.memory_space<vmem>>, vector<8x32xf32>
    %c432 = arith.constant 432 : index
    %c0_3 = arith.constant 0 : index
    %8 = vector.load %arg1[%c432, %c0_3] : memref<496x128xf32, #tpu.memory_space<vmem>>, vector<64x16xf32>
    %c0_4 = arith.constant 0 : index
    %c0_5 = arith.constant 0 : index
    %9 = vector.load %arg0[%c0_4, %c0_5] : memref<16x32xf32, #tpu.memory_space<vmem>>, vector<16x32xf32>
    %10 = arith.addf %9, %5 : vector<16x32xf32>
    %cst = arith.constant 2.000000e+00 : f32
    %11 = vector.broadcast %cst : f32 to vector<16x32xf32>
    %12 = arith.mulf %11, %10 : vector<16x32xf32>
    %c0_6 = arith.constant 0 : index
    %c0_7 = arith.constant 0 : index
    %13 = vector.load %arg1[%c0_6, %c0_7] : memref<496x128xf32, #tpu.memory_space<vmem>>, vector<32x96xf32>
    %c32 = arith.constant 32 : index
    %c0_8 = arith.constant 0 : index
    %14 = vector.load %arg1[%c32, %c0_8] : memref<496x128xf32, #tpu.memory_space<vmem>>, vector<32x32xf32>
    %c64 = arith.constant 64 : index
    %c0_9 = arith.constant 0 : index
    %15 = vector.load %arg1[%c64, %c0_9] : memref<496x128xf32, #tpu.memory_space<vmem>>, vector<32x64xf32>
    %c96 = arith.constant 96 : index
    %c0_10 = arith.constant 0 : index
    %16 = vector.load %arg1[%c96, %c0_10] : memref<496x128xf32, #tpu.memory_space<vmem>>, vector<64x32xf32>
    %c160 = arith.constant 160 : index
    %c0_11 = arith.constant 0 : index
    %17 = vector.load %arg1[%c160, %c0_11] : memref<496x128xf32, #tpu.memory_space<vmem>>, vector<8x128xf32>
    %18 = vector.extract_strided_slice %17 {offsets = [0, 0], sizes = [1, 96], strides = [1, 1]} : vector<8x128xf32> to vector<1x96xf32>
    %19 = vector.extract_strided_slice %17 {offsets = [1, 0], sizes = [1, 64], strides = [1, 1]} : vector<8x128xf32> to vector<1x64xf32>
    %20 = vector.extract_strided_slice %17 {offsets = [2, 0], sizes = [1, 32], strides = [1, 1]} : vector<8x128xf32> to vector<1x32xf32>
    %21 = vector.extract_strided_slice %17 {offsets = [3, 0], sizes = [1, 32], strides = [1, 1]} : vector<8x128xf32> to vector<1x32xf32>
    %22 = vector.extract_strided_slice %17 {offsets = [4, 0], sizes = [1, 32], strides = [1, 1]} : vector<8x128xf32> to vector<1x32xf32>
    %23 = vector.extract_strided_slice %17 {offsets = [5, 0], sizes = [1, 32], strides = [1, 1]} : vector<8x128xf32> to vector<1x32xf32>
    %24 = vector.extract_strided_slice %17 {offsets = [6, 0], sizes = [1, 32], strides = [1, 1]} : vector<8x128xf32> to vector<1x32xf32>
    %25 = vector.extract_strided_slice %17 {offsets = [7, 0], sizes = [1, 32], strides = [1, 1]} : vector<8x128xf32> to vector<1x32xf32>
    %cst_12 = arith.constant dense<0.000000e+00> : vector<16xf32>
    %26 = vector.multi_reduction <add>, %12, %cst_12 [1] : vector<16x32xf32> to vector<16xf32>
    %27 = vector.shape_cast %26 : vector<16xf32> to vector<16x1xf32>
    %cst_13 = arith.constant 3.200000e+01 : f32
    %28 = vector.broadcast %cst_13 : f32 to vector<16x1xf32>
    %29 = arith.divf %27, %28 : vector<16x1xf32>
    %30 = vector.broadcast %29 : vector<16x1xf32> to vector<16x32xf32>
    %31 = arith.subf %12, %30 : vector<16x32xf32>
    %32 = arith.mulf %31, %31 : vector<16x32xf32>
    %cst_14 = arith.constant dense<0.000000e+00> : vector<16xf32>
    %33 = vector.multi_reduction <add>, %32, %cst_14 [1] : vector<16x32xf32> to vector<16xf32>
    %34 = vector.shape_cast %33 : vector<16xf32> to vector<16x1xf32>
    %cst_15 = arith.constant 3.200000e+01 : f32
    %35 = vector.broadcast %cst_15 : f32 to vector<16x1xf32>
    %36 = arith.divf %34, %35 : vector<16x1xf32>
    %cst_16 = arith.constant 9.99999974E-6 : f32
    %37 = vector.broadcast %cst_16 : f32 to vector<16x1xf32>
    %38 = arith.addf %36, %37 : vector<16x1xf32>
    %39 = math.rsqrt %38 : vector<16x1xf32>
    %40 = vector.broadcast %39 : vector<16x1xf32> to vector<16x32xf32>
    %41 = arith.mulf %31, %40 : vector<16x32xf32>
    %42 = vector.broadcast %21 : vector<1x32xf32> to vector<16x32xf32>
    %43 = arith.mulf %41, %42 : vector<16x32xf32>
    %44 = vector.broadcast %22 : vector<1x32xf32> to vector<16x32xf32>
    %45 = arith.addf %43, %44 : vector<16x32xf32>
    %cst_17 = arith.constant dense<0.000000e+00> : vector<16x96xf32>
    %46 = tpu.matmul %45, %13, %cst_17 {dimension_numbers = #tpu.dot_dimension_numbers<[1], [0], [0], [1], [0, 0, 1, 1], [], []>} : vector<16x32xf32>, vector<32x96xf32>, vector<16x96xf32> -> vector<16x96xf32>
    %47 = vector.broadcast %18 : vector<1x96xf32> to vector<16x96xf32>
    %48 = arith.addf %46, %47 : vector<16x96xf32>
    %49 = vector.extract_strided_slice %48 {offsets = [0, 0], sizes = [16, 32], strides = [1, 1]} : vector<16x96xf32> to vector<16x32xf32>
    %50 = vector.extract_strided_slice %48 {offsets = [0, 32], sizes = [16, 32], strides = [1, 1]} : vector<16x96xf32> to vector<16x32xf32>
    %51 = vector.extract_strided_slice %48 {offsets = [0, 64], sizes = [16, 32], strides = [1, 1]} : vector<16x96xf32> to vector<16x32xf32>
    %52 = tpu.concatenate %49, %49, %49, %49 in 0 : vector<16x32xf32>, vector<16x32xf32>, vector<16x32xf32>, vector<16x32xf32> -> vector<64x32xf32>
    %53 = arith.mulf %52, %6 : vector<64x32xf32>
    %cst_18 = arith.constant dense<0.000000e+00> : vector<64x16xf32>
    %54 = tpu.matmul %53, %50, %cst_18 {dimension_numbers = #tpu.dot_dimension_numbers<[1], [1], [0], [0], [0, 0, 1, 0], [], []>} : vector<64x32xf32>, vector<16x32xf32>, vector<64x16xf32> -> vector<64x16xf32>
    %55 = arith.addf %54, %8 : vector<64x16xf32>
    %cst_19 = arith.constant dense<0xFF800000> : vector<64xf32>
    %56 = vector.multi_reduction <maximumf>, %55, %cst_19 [1] : vector<64x16xf32> to vector<64xf32>
    %57 = vector.shape_cast %56 : vector<64xf32> to vector<64x1xf32>
    %58 = vector.broadcast %57 : vector<64x1xf32> to vector<64x16xf32>
    %59 = arith.subf %55, %58 : vector<64x16xf32>
    %60 = math.exp %59 : vector<64x16xf32>
    %cst_20 = arith.constant dense<0.000000e+00> : vector<64xf32>
    %61 = vector.multi_reduction <add>, %60, %cst_20 [1] : vector<64x16xf32> to vector<64xf32>
    %62 = vector.shape_cast %61 : vector<64xf32> to vector<64x1xf32>
    %63 = tpu.reciprocal %62 {approx = true} : vector<64x1xf32> -> vector<64x1xf32>
    %64 = vector.broadcast %63 : vector<64x1xf32> to vector<64x16xf32>
    %65 = arith.mulf %60, %64 : vector<64x16xf32>
    %cst_21 = arith.constant dense<0.000000e+00> : vector<64x32xf32>
    %66 = tpu.matmul %65, %51, %cst_21 {dimension_numbers = #tpu.dot_dimension_numbers<[1], [0], [0], [1], [0, 0, 1, 1], [], []>} : vector<64x16xf32>, vector<16x32xf32>, vector<64x32xf32> -> vector<64x32xf32>
    %67 = arith.mulf %66, %6 : vector<64x32xf32>
    %68 = vector.extract_strided_slice %67 {offsets = [0, 0], sizes = [16, 32], strides = [1, 1]} : vector<64x32xf32> to vector<16x32xf32>
    %69 = vector.extract_strided_slice %67 {offsets = [16, 0], sizes = [16, 32], strides = [1, 1]} : vector<64x32xf32> to vector<16x32xf32>
    %70 = arith.addf %68, %69 : vector<16x32xf32>
    %71 = vector.extract_strided_slice %67 {offsets = [32, 0], sizes = [16, 32], strides = [1, 1]} : vector<64x32xf32> to vector<16x32xf32>
    %72 = arith.addf %70, %71 : vector<16x32xf32>
    %73 = vector.extract_strided_slice %67 {offsets = [48, 0], sizes = [16, 32], strides = [1, 1]} : vector<64x32xf32> to vector<16x32xf32>
    %74 = arith.addf %72, %73 : vector<16x32xf32>
    %cst_22 = arith.constant dense<0.000000e+00> : vector<16x32xf32>
    %75 = tpu.matmul %74, %14, %cst_22 {dimension_numbers = #tpu.dot_dimension_numbers<[1], [0], [0], [1], [0, 0, 1, 1], [], []>} : vector<16x32xf32>, vector<32x32xf32>, vector<16x32xf32> -> vector<16x32xf32>
    %76 = arith.addf %12, %75 : vector<16x32xf32>
    %77 = vector.broadcast %20 : vector<1x32xf32> to vector<16x32xf32>
    %78 = arith.addf %76, %77 : vector<16x32xf32>
    %cst_23 = arith.constant dense<0.000000e+00> : vector<16xf32>
    %79 = vector.multi_reduction <add>, %78, %cst_23 [1] : vector<16x32xf32> to vector<16xf32>
    %80 = vector.shape_cast %79 : vector<16xf32> to vector<16x1xf32>
    %cst_24 = arith.constant 3.200000e+01 : f32
    %81 = vector.broadcast %cst_24 : f32 to vector<16x1xf32>
    %82 = arith.divf %80, %81 : vector<16x1xf32>
    %83 = vector.broadcast %82 : vector<16x1xf32> to vector<16x32xf32>
    %84 = arith.subf %78, %83 : vector<16x32xf32>
    %85 = arith.mulf %84, %84 : vector<16x32xf32>
    %cst_25 = arith.constant dense<0.000000e+00> : vector<16xf32>
    %86 = vector.multi_reduction <add>, %85, %cst_25 [1] : vector<16x32xf32> to vector<16xf32>
    %87 = vector.shape_cast %86 : vector<16xf32> to vector<16x1xf32>
    %cst_26 = arith.constant 3.200000e+01 : f32
    %88 = vector.broadcast %cst_26 : f32 to vector<16x1xf32>
    %89 = arith.divf %87, %88 : vector<16x1xf32>
    %cst_27 = arith.constant 9.99999974E-6 : f32
    %90 = vector.broadcast %cst_27 : f32 to vector<16x1xf32>
    %91 = arith.addf %89, %90 : vector<16x1xf32>
    %92 = math.rsqrt %91 : vector<16x1xf32>
    %93 = vector.broadcast %92 : vector<16x1xf32> to vector<16x32xf32>
    %94 = arith.mulf %84, %93 : vector<16x32xf32>
    %95 = vector.broadcast %23 : vector<1x32xf32> to vector<16x32xf32>
    %96 = arith.mulf %94, %95 : vector<16x32xf32>
    %97 = vector.broadcast %24 : vector<1x32xf32> to vector<16x32xf32>
    %98 = arith.addf %96, %97 : vector<16x32xf32>
    %cst_28 = arith.constant dense<0.000000e+00> : vector<16x64xf32>
    %99 = tpu.matmul %98, %15, %cst_28 {dimension_numbers = #tpu.dot_dimension_numbers<[1], [0], [0], [1], [0, 0, 1, 1], [], []>} : vector<16x32xf32>, vector<32x64xf32>, vector<16x64xf32> -> vector<16x64xf32>
    %100 = vector.broadcast %19 : vector<1x64xf32> to vector<16x64xf32>
    %101 = arith.addf %99, %100 : vector<16x64xf32>
    %102 = arith.mulf %101, %101 : vector<16x64xf32>
    %103 = arith.mulf %101, %102 : vector<16x64xf32>
    %cst_29 = arith.constant 4.471500e-02 : f32
    %104 = vector.broadcast %cst_29 : f32 to vector<16x64xf32>
    %105 = arith.mulf %104, %103 : vector<16x64xf32>
    %106 = arith.addf %101, %105 : vector<16x64xf32>
    %cst_30 = arith.constant 0.797884583 : f32
    %107 = vector.broadcast %cst_30 : f32 to vector<16x64xf32>
    %108 = arith.mulf %107, %106 : vector<16x64xf32>
    %109 = math.tanh %108 : vector<16x64xf32>
    %cst_31 = arith.constant 1.000000e+00 : f32
    %110 = vector.broadcast %cst_31 : f32 to vector<16x64xf32>
    %111 = arith.addf %110, %109 : vector<16x64xf32>
    %cst_32 = arith.constant 5.000000e-01 : f32
    %112 = vector.broadcast %cst_32 : f32 to vector<16x64xf32>
    %113 = arith.mulf %112, %111 : vector<16x64xf32>
    %114 = arith.mulf %101, %113 : vector<16x64xf32>
    %cst_33 = arith.constant dense<0.000000e+00> : vector<16x32xf32>
    %115 = tpu.matmul %114, %16, %cst_33 {dimension_numbers = #tpu.dot_dimension_numbers<[1], [0], [0], [1], [0, 0, 1, 1], [], []>} : vector<16x64xf32>, vector<64x32xf32>, vector<16x32xf32> -> vector<16x32xf32>
    %116 = arith.addf %78, %115 : vector<16x32xf32>
    %117 = vector.broadcast %25 : vector<1x32xf32> to vector<16x32xf32>
    %118 = arith.addf %116, %117 : vector<16x32xf32>
    %c168 = arith.constant 168 : index
    %c0_34 = arith.constant 0 : index
    %119 = vector.load %arg1[%c168, %c0_34] : memref<496x128xf32, #tpu.memory_space<vmem>>, vector<32x96xf32>
    %c200 = arith.constant 200 : index
    %c0_35 = arith.constant 0 : index
    %120 = vector.load %arg1[%c200, %c0_35] : memref<496x128xf32, #tpu.memory_space<vmem>>, vector<32x32xf32>
    %c232 = arith.constant 232 : index
    %c0_36 = arith.constant 0 : index
    %121 = vector.load %arg1[%c232, %c0_36] : memref<496x128xf32, #tpu.memory_space<vmem>>, vector<32x64xf32>
    %c264 = arith.constant 264 : index
    %c0_37 = arith.constant 0 : index
    %122 = vector.load %arg1[%c264, %c0_37] : memref<496x128xf32, #tpu.memory_space<vmem>>, vector<64x32xf32>
    %c328 = arith.constant 328 : index
    %c0_38 = arith.constant 0 : index
    %123 = vector.load %arg1[%c328, %c0_38] : memref<496x128xf32, #tpu.memory_space<vmem>>, vector<8x128xf32>
    %124 = vector.extract_strided_slice %123 {offsets = [0, 0], sizes = [1, 96], strides = [1, 1]} : vector<8x128xf32> to vector<1x96xf32>
    %125 = vector.extract_strided_slice %123 {offsets = [1, 0], sizes = [1, 64], strides = [1, 1]} : vector<8x128xf32> to vector<1x64xf32>
    %126 = vector.extract_strided_slice %123 {offsets = [2, 0], sizes = [1, 32], strides = [1, 1]} : vector<8x128xf32> to vector<1x32xf32>
    %127 = vector.extract_strided_slice %123 {offsets = [3, 0], sizes = [1, 32], strides = [1, 1]} : vector<8x128xf32> to vector<1x32xf32>
    %128 = vector.extract_strided_slice %123 {offsets = [4, 0], sizes = [1, 32], strides = [1, 1]} : vector<8x128xf32> to vector<1x32xf32>
    %129 = vector.extract_strided_slice %123 {offsets = [5, 0], sizes = [1, 32], strides = [1, 1]} : vector<8x128xf32> to vector<1x32xf32>
    %130 = vector.extract_strided_slice %123 {offsets = [6, 0], sizes = [1, 32], strides = [1, 1]} : vector<8x128xf32> to vector<1x32xf32>
    %131 = vector.extract_strided_slice %123 {offsets = [7, 0], sizes = [1, 32], strides = [1, 1]} : vector<8x128xf32> to vector<1x32xf32>
    %cst_39 = arith.constant dense<0.000000e+00> : vector<16xf32>
    %132 = vector.multi_reduction <add>, %118, %cst_39 [1] : vector<16x32xf32> to vector<16xf32>
    %133 = vector.shape_cast %132 : vector<16xf32> to vector<16x1xf32>
    %cst_40 = arith.constant 3.200000e+01 : f32
    %134 = vector.broadcast %cst_40 : f32 to vector<16x1xf32>
    %135 = arith.divf %133, %134 : vector<16x1xf32>
    %136 = vector.broadcast %135 : vector<16x1xf32> to vector<16x32xf32>
    %137 = arith.subf %118, %136 : vector<16x32xf32>
    %138 = arith.mulf %137, %137 : vector<16x32xf32>
    %cst_41 = arith.constant dense<0.000000e+00> : vector<16xf32>
    %139 = vector.multi_reduction <add>, %138, %cst_41 [1] : vector<16x32xf32> to vector<16xf32>
    %140 = vector.shape_cast %139 : vector<16xf32> to vector<16x1xf32>
    %cst_42 = arith.constant 3.200000e+01 : f32
    %141 = vector.broadcast %cst_42 : f32 to vector<16x1xf32>
    %142 = arith.divf %140, %141 : vector<16x1xf32>
    %cst_43 = arith.constant 9.99999974E-6 : f32
    %143 = vector.broadcast %cst_43 : f32 to vector<16x1xf32>
    %144 = arith.addf %142, %143 : vector<16x1xf32>
    %145 = math.rsqrt %144 : vector<16x1xf32>
    %146 = vector.broadcast %145 : vector<16x1xf32> to vector<16x32xf32>
    %147 = arith.mulf %137, %146 : vector<16x32xf32>
    %148 = vector.broadcast %127 : vector<1x32xf32> to vector<16x32xf32>
    %149 = arith.mulf %147, %148 : vector<16x32xf32>
    %150 = vector.broadcast %128 : vector<1x32xf32> to vector<16x32xf32>
    %151 = arith.addf %149, %150 : vector<16x32xf32>
    %cst_44 = arith.constant dense<0.000000e+00> : vector<16x96xf32>
    %152 = tpu.matmul %151, %119, %cst_44 {dimension_numbers = #tpu.dot_dimension_numbers<[1], [0], [0], [1], [0, 0, 1, 1], [], []>} : vector<16x32xf32>, vector<32x96xf32>, vector<16x96xf32> -> vector<16x96xf32>
    %153 = vector.broadcast %124 : vector<1x96xf32> to vector<16x96xf32>
    %154 = arith.addf %152, %153 : vector<16x96xf32>
    %155 = vector.extract_strided_slice %154 {offsets = [0, 0], sizes = [16, 32], strides = [1, 1]} : vector<16x96xf32> to vector<16x32xf32>
    %156 = vector.extract_strided_slice %154 {offsets = [0, 32], sizes = [16, 32], strides = [1, 1]} : vector<16x96xf32> to vector<16x32xf32>
    %157 = vector.extract_strided_slice %154 {offsets = [0, 64], sizes = [16, 32], strides = [1, 1]} : vector<16x96xf32> to vector<16x32xf32>
    %158 = tpu.concatenate %155, %155, %155, %155 in 0 : vector<16x32xf32>, vector<16x32xf32>, vector<16x32xf32>, vector<16x32xf32> -> vector<64x32xf32>
    %159 = arith.mulf %158, %6 : vector<64x32xf32>
    %cst_45 = arith.constant dense<0.000000e+00> : vector<64x16xf32>
    %160 = tpu.matmul %159, %156, %cst_45 {dimension_numbers = #tpu.dot_dimension_numbers<[1], [1], [0], [0], [0, 0, 1, 0], [], []>} : vector<64x32xf32>, vector<16x32xf32>, vector<64x16xf32> -> vector<64x16xf32>
    %161 = arith.addf %160, %8 : vector<64x16xf32>
    %cst_46 = arith.constant dense<0xFF800000> : vector<64xf32>
    %162 = vector.multi_reduction <maximumf>, %161, %cst_46 [1] : vector<64x16xf32> to vector<64xf32>
    %163 = vector.shape_cast %162 : vector<64xf32> to vector<64x1xf32>
    %164 = vector.broadcast %163 : vector<64x1xf32> to vector<64x16xf32>
    %165 = arith.subf %161, %164 : vector<64x16xf32>
    %166 = math.exp %165 : vector<64x16xf32>
    %cst_47 = arith.constant dense<0.000000e+00> : vector<64xf32>
    %167 = vector.multi_reduction <add>, %166, %cst_47 [1] : vector<64x16xf32> to vector<64xf32>
    %168 = vector.shape_cast %167 : vector<64xf32> to vector<64x1xf32>
    %169 = tpu.reciprocal %168 {approx = true} : vector<64x1xf32> -> vector<64x1xf32>
    %170 = vector.broadcast %169 : vector<64x1xf32> to vector<64x16xf32>
    %171 = arith.mulf %166, %170 : vector<64x16xf32>
    %cst_48 = arith.constant dense<0.000000e+00> : vector<64x32xf32>
    %172 = tpu.matmul %171, %157, %cst_48 {dimension_numbers = #tpu.dot_dimension_numbers<[1], [0], [0], [1], [0, 0, 1, 1], [], []>} : vector<64x16xf32>, vector<16x32xf32>, vector<64x32xf32> -> vector<64x32xf32>
    %173 = arith.mulf %172, %6 : vector<64x32xf32>
    %174 = vector.extract_strided_slice %173 {offsets = [0, 0], sizes = [16, 32], strides = [1, 1]} : vector<64x32xf32> to vector<16x32xf32>
    %175 = vector.extract_strided_slice %173 {offsets = [16, 0], sizes = [16, 32], strides = [1, 1]} : vector<64x32xf32> to vector<16x32xf32>
    %176 = arith.addf %174, %175 : vector<16x32xf32>
    %177 = vector.extract_strided_slice %173 {offsets = [32, 0], sizes = [16, 32], strides = [1, 1]} : vector<64x32xf32> to vector<16x32xf32>
    %178 = arith.addf %176, %177 : vector<16x32xf32>
    %179 = vector.extract_strided_slice %173 {offsets = [48, 0], sizes = [16, 32], strides = [1, 1]} : vector<64x32xf32> to vector<16x32xf32>
    %180 = arith.addf %178, %179 : vector<16x32xf32>
    %cst_49 = arith.constant dense<0.000000e+00> : vector<16x32xf32>
    %181 = tpu.matmul %180, %120, %cst_49 {dimension_numbers = #tpu.dot_dimension_numbers<[1], [0], [0], [1], [0, 0, 1, 1], [], []>} : vector<16x32xf32>, vector<32x32xf32>, vector<16x32xf32> -> vector<16x32xf32>
    %182 = arith.addf %118, %181 : vector<16x32xf32>
    %183 = vector.broadcast %126 : vector<1x32xf32> to vector<16x32xf32>
    %184 = arith.addf %182, %183 : vector<16x32xf32>
    %cst_50 = arith.constant dense<0.000000e+00> : vector<16xf32>
    %185 = vector.multi_reduction <add>, %184, %cst_50 [1] : vector<16x32xf32> to vector<16xf32>
    %186 = vector.shape_cast %185 : vector<16xf32> to vector<16x1xf32>
    %cst_51 = arith.constant 3.200000e+01 : f32
    %187 = vector.broadcast %cst_51 : f32 to vector<16x1xf32>
    %188 = arith.divf %186, %187 : vector<16x1xf32>
    %189 = vector.broadcast %188 : vector<16x1xf32> to vector<16x32xf32>
    %190 = arith.subf %184, %189 : vector<16x32xf32>
    %191 = arith.mulf %190, %190 : vector<16x32xf32>
    %cst_52 = arith.constant dense<0.000000e+00> : vector<16xf32>
    %192 = vector.multi_reduction <add>, %191, %cst_52 [1] : vector<16x32xf32> to vector<16xf32>
    %193 = vector.shape_cast %192 : vector<16xf32> to vector<16x1xf32>
    %cst_53 = arith.constant 3.200000e+01 : f32
    %194 = vector.broadcast %cst_53 : f32 to vector<16x1xf32>
    %195 = arith.divf %193, %194 : vector<16x1xf32>
    %cst_54 = arith.constant 9.99999974E-6 : f32
    %196 = vector.broadcast %cst_54 : f32 to vector<16x1xf32>
    %197 = arith.addf %195, %196 : vector<16x1xf32>
    %198 = math.rsqrt %197 : vector<16x1xf32>
    %199 = vector.broadcast %198 : vector<16x1xf32> to vector<16x32xf32>
    %200 = arith.mulf %190, %199 : vector<16x32xf32>
    %201 = vector.broadcast %129 : vector<1x32xf32> to vector<16x32xf32>
    %202 = arith.mulf %200, %201 : vector<16x32xf32>
    %203 = vector.broadcast %130 : vector<1x32xf32> to vector<16x32xf32>
    %204 = arith.addf %202, %203 : vector<16x32xf32>
    %cst_55 = arith.constant dense<0.000000e+00> : vector<16x64xf32>
    %205 = tpu.matmul %204, %121, %cst_55 {dimension_numbers = #tpu.dot_dimension_numbers<[1], [0], [0], [1], [0, 0, 1, 1], [], []>} : vector<16x32xf32>, vector<32x64xf32>, vector<16x64xf32> -> vector<16x64xf32>
    %206 = vector.broadcast %125 : vector<1x64xf32> to vector<16x64xf32>
    %207 = arith.addf %205, %206 : vector<16x64xf32>
    %208 = arith.mulf %207, %207 : vector<16x64xf32>
    %209 = arith.mulf %207, %208 : vector<16x64xf32>
    %cst_56 = arith.constant 4.471500e-02 : f32
    %210 = vector.broadcast %cst_56 : f32 to vector<16x64xf32>
    %211 = arith.mulf %210, %209 : vector<16x64xf32>
    %212 = arith.addf %207, %211 : vector<16x64xf32>
    %cst_57 = arith.constant 0.797884583 : f32
    %213 = vector.broadcast %cst_57 : f32 to vector<16x64xf32>
    %214 = arith.mulf %213, %212 : vector<16x64xf32>
    %215 = math.tanh %214 : vector<16x64xf32>
    %cst_58 = arith.constant 1.000000e+00 : f32
    %216 = vector.broadcast %cst_58 : f32 to vector<16x64xf32>
    %217 = arith.addf %216, %215 : vector<16x64xf32>
    %cst_59 = arith.constant 5.000000e-01 : f32
    %218 = vector.broadcast %cst_59 : f32 to vector<16x64xf32>
    %219 = arith.mulf %218, %217 : vector<16x64xf32>
    %220 = arith.mulf %207, %219 : vector<16x64xf32>
    %cst_60 = arith.constant dense<0.000000e+00> : vector<16x32xf32>
    %221 = tpu.matmul %220, %122, %cst_60 {dimension_numbers = #tpu.dot_dimension_numbers<[1], [0], [0], [1], [0, 0, 1, 1], [], []>} : vector<16x64xf32>, vector<64x32xf32>, vector<16x32xf32> -> vector<16x32xf32>
    %222 = arith.addf %184, %221 : vector<16x32xf32>
    %223 = vector.broadcast %131 : vector<1x32xf32> to vector<16x32xf32>
    %224 = arith.addf %222, %223 : vector<16x32xf32>
    %cst_61 = arith.constant dense<0.000000e+00> : vector<16xf32>
    %225 = vector.multi_reduction <add>, %224, %cst_61 [1] : vector<16x32xf32> to vector<16xf32>
    %226 = vector.shape_cast %225 : vector<16xf32> to vector<16x1xf32>
    %cst_62 = arith.constant 3.200000e+01 : f32
    %227 = vector.broadcast %cst_62 : f32 to vector<16x1xf32>
    %228 = arith.divf %226, %227 : vector<16x1xf32>
    %229 = vector.broadcast %228 : vector<16x1xf32> to vector<16x32xf32>
    %230 = arith.subf %224, %229 : vector<16x32xf32>
    %231 = arith.mulf %230, %230 : vector<16x32xf32>
    %cst_63 = arith.constant dense<0.000000e+00> : vector<16xf32>
    %232 = vector.multi_reduction <add>, %231, %cst_63 [1] : vector<16x32xf32> to vector<16xf32>
    %233 = vector.shape_cast %232 : vector<16xf32> to vector<16x1xf32>
    %cst_64 = arith.constant 3.200000e+01 : f32
    %234 = vector.broadcast %cst_64 : f32 to vector<16x1xf32>
    %235 = arith.divf %233, %234 : vector<16x1xf32>
    %cst_65 = arith.constant 9.99999974E-6 : f32
    %236 = vector.broadcast %cst_65 : f32 to vector<16x1xf32>
    %237 = arith.addf %235, %236 : vector<16x1xf32>
    %238 = math.rsqrt %237 : vector<16x1xf32>
    %239 = vector.broadcast %238 : vector<16x1xf32> to vector<16x32xf32>
    %240 = arith.mulf %230, %239 : vector<16x32xf32>
    %241 = vector.broadcast %1 : vector<1x32xf32> to vector<16x32xf32>
    %242 = arith.mulf %240, %241 : vector<16x32xf32>
    %243 = vector.broadcast %2 : vector<1x32xf32> to vector<16x32xf32>
    %244 = arith.addf %242, %243 : vector<16x32xf32>
    %245 = vector.extract_strided_slice %244 {offsets = [7, 0], sizes = [1, 32], strides = [1, 1]} : vector<16x32xf32> to vector<1x32xf32>
    %246 = vector.extract_strided_slice %244 {offsets = [15, 0], sizes = [1, 32], strides = [1, 1]} : vector<16x32xf32> to vector<1x32xf32>
    %247 = tpu.concatenate %245, %246 in 0 : vector<1x32xf32>, vector<1x32xf32> -> vector<2x32xf32>
    %c0_66 = arith.constant 0 : index
    %c0_67 = arith.constant 0 : index
    %248 = vector.load %arg1[%c0_66, %c0_67] : memref<496x128xf32, #tpu.memory_space<vmem>>, vector<32x96xf32>
    %c32_68 = arith.constant 32 : index
    %c0_69 = arith.constant 0 : index
    %249 = vector.load %arg1[%c32_68, %c0_69] : memref<496x128xf32, #tpu.memory_space<vmem>>, vector<32x32xf32>
    %c64_70 = arith.constant 64 : index
    %c0_71 = arith.constant 0 : index
    %250 = vector.load %arg1[%c64_70, %c0_71] : memref<496x128xf32, #tpu.memory_space<vmem>>, vector<32x64xf32>
    %c96_72 = arith.constant 96 : index
    %c0_73 = arith.constant 0 : index
    %251 = vector.load %arg1[%c96_72, %c0_73] : memref<496x128xf32, #tpu.memory_space<vmem>>, vector<64x32xf32>
    %c160_74 = arith.constant 160 : index
    %c0_75 = arith.constant 0 : index
    %252 = vector.load %arg1[%c160_74, %c0_75] : memref<496x128xf32, #tpu.memory_space<vmem>>, vector<8x128xf32>
    %253 = vector.extract_strided_slice %252 {offsets = [0, 0], sizes = [1, 96], strides = [1, 1]} : vector<8x128xf32> to vector<1x96xf32>
    %254 = vector.extract_strided_slice %252 {offsets = [1, 0], sizes = [1, 64], strides = [1, 1]} : vector<8x128xf32> to vector<1x64xf32>
    %255 = vector.extract_strided_slice %252 {offsets = [2, 0], sizes = [1, 32], strides = [1, 1]} : vector<8x128xf32> to vector<1x32xf32>
    %256 = vector.extract_strided_slice %252 {offsets = [3, 0], sizes = [1, 32], strides = [1, 1]} : vector<8x128xf32> to vector<1x32xf32>
    %257 = vector.extract_strided_slice %252 {offsets = [4, 0], sizes = [1, 32], strides = [1, 1]} : vector<8x128xf32> to vector<1x32xf32>
    %258 = vector.extract_strided_slice %252 {offsets = [5, 0], sizes = [1, 32], strides = [1, 1]} : vector<8x128xf32> to vector<1x32xf32>
    %259 = vector.extract_strided_slice %252 {offsets = [6, 0], sizes = [1, 32], strides = [1, 1]} : vector<8x128xf32> to vector<1x32xf32>
    %260 = vector.extract_strided_slice %252 {offsets = [7, 0], sizes = [1, 32], strides = [1, 1]} : vector<8x128xf32> to vector<1x32xf32>
    %cst_76 = arith.constant dense<0.000000e+00> : vector<2xf32>
    %261 = vector.multi_reduction <add>, %247, %cst_76 [1] : vector<2x32xf32> to vector<2xf32>
    %262 = vector.shape_cast %261 : vector<2xf32> to vector<2x1xf32>
    %cst_77 = arith.constant 3.200000e+01 : f32
    %263 = vector.broadcast %cst_77 : f32 to vector<2x1xf32>
    %264 = arith.divf %262, %263 : vector<2x1xf32>
    %265 = vector.broadcast %264 : vector<2x1xf32> to vector<2x32xf32>
    %266 = arith.subf %247, %265 : vector<2x32xf32>
    %267 = arith.mulf %266, %266 : vector<2x32xf32>
    %cst_78 = arith.constant dense<0.000000e+00> : vector<2xf32>
    %268 = vector.multi_reduction <add>, %267, %cst_78 [1] : vector<2x32xf32> to vector<2xf32>
    %269 = vector.shape_cast %268 : vector<2xf32> to vector<2x1xf32>
    %cst_79 = arith.constant 3.200000e+01 : f32
    %270 = vector.broadcast %cst_79 : f32 to vector<2x1xf32>
    %271 = arith.divf %269, %270 : vector<2x1xf32>
    %cst_80 = arith.constant 9.99999974E-6 : f32
    %272 = vector.broadcast %cst_80 : f32 to vector<2x1xf32>
    %273 = arith.addf %271, %272 : vector<2x1xf32>
    %274 = math.rsqrt %273 : vector<2x1xf32>
    %275 = vector.broadcast %274 : vector<2x1xf32> to vector<2x32xf32>
    %276 = arith.mulf %266, %275 : vector<2x32xf32>
    %277 = vector.broadcast %256 : vector<1x32xf32> to vector<2x32xf32>
    %278 = arith.mulf %276, %277 : vector<2x32xf32>
    %279 = vector.broadcast %257 : vector<1x32xf32> to vector<2x32xf32>
    %280 = arith.addf %278, %279 : vector<2x32xf32>
    %cst_81 = arith.constant dense<0.000000e+00> : vector<2x96xf32>
    %281 = tpu.matmul %280, %248, %cst_81 {dimension_numbers = #tpu.dot_dimension_numbers<[1], [0], [0], [1], [0, 0, 1, 1], [], []>} : vector<2x32xf32>, vector<32x96xf32>, vector<2x96xf32> -> vector<2x96xf32>
    %282 = vector.broadcast %253 : vector<1x96xf32> to vector<2x96xf32>
    %283 = arith.addf %281, %282 : vector<2x96xf32>
    %284 = vector.extract_strided_slice %283 {offsets = [0, 0], sizes = [2, 32], strides = [1, 1]} : vector<2x96xf32> to vector<2x32xf32>
    %285 = vector.extract_strided_slice %283 {offsets = [0, 32], sizes = [2, 32], strides = [1, 1]} : vector<2x96xf32> to vector<2x32xf32>
    %286 = vector.extract_strided_slice %283 {offsets = [0, 64], sizes = [2, 32], strides = [1, 1]} : vector<2x96xf32> to vector<2x32xf32>
    %287 = tpu.concatenate %284, %284, %284, %284 in 0 : vector<2x32xf32>, vector<2x32xf32>, vector<2x32xf32>, vector<2x32xf32> -> vector<8x32xf32>
    %288 = arith.mulf %287, %7 : vector<8x32xf32>
    %cst_82 = arith.constant dense<0.000000e+00> : vector<8x2xf32>
    %289 = tpu.matmul %288, %285, %cst_82 {dimension_numbers = #tpu.dot_dimension_numbers<[1], [1], [0], [0], [0, 0, 1, 0], [], []>} : vector<8x32xf32>, vector<2x32xf32>, vector<8x2xf32> -> vector<8x2xf32>
    %cst_83 = arith.constant dense<0xFF800000> : vector<8xf32>
    %290 = vector.multi_reduction <maximumf>, %289, %cst_83 [1] : vector<8x2xf32> to vector<8xf32>
    %291 = vector.shape_cast %290 : vector<8xf32> to vector<8x1xf32>
    %292 = vector.broadcast %291 : vector<8x1xf32> to vector<8x2xf32>
    %293 = arith.subf %289, %292 : vector<8x2xf32>
    %294 = math.exp %293 : vector<8x2xf32>
    %cst_84 = arith.constant dense<0.000000e+00> : vector<8xf32>
    %295 = vector.multi_reduction <add>, %294, %cst_84 [1] : vector<8x2xf32> to vector<8xf32>
    %296 = vector.shape_cast %295 : vector<8xf32> to vector<8x1xf32>
    %297 = tpu.reciprocal %296 {approx = true} : vector<8x1xf32> -> vector<8x1xf32>
    %298 = vector.broadcast %297 : vector<8x1xf32> to vector<8x2xf32>
    %299 = arith.mulf %294, %298 : vector<8x2xf32>
    %cst_85 = arith.constant dense<0.000000e+00> : vector<8x32xf32>
    %300 = tpu.matmul %299, %286, %cst_85 {dimension_numbers = #tpu.dot_dimension_numbers<[1], [0], [0], [1], [0, 0, 1, 1], [], []>} : vector<8x2xf32>, vector<2x32xf32>, vector<8x32xf32> -> vector<8x32xf32>
    %301 = arith.mulf %300, %7 : vector<8x32xf32>
    %302 = vector.extract_strided_slice %301 {offsets = [0, 0], sizes = [2, 32], strides = [1, 1]} : vector<8x32xf32> to vector<2x32xf32>
    %303 = vector.extract_strided_slice %301 {offsets = [2, 0], sizes = [2, 32], strides = [1, 1]} : vector<8x32xf32> to vector<2x32xf32>
    %304 = arith.addf %302, %303 : vector<2x32xf32>
    %305 = vector.extract_strided_slice %301 {offsets = [4, 0], sizes = [2, 32], strides = [1, 1]} : vector<8x32xf32> to vector<2x32xf32>
    %306 = arith.addf %304, %305 : vector<2x32xf32>
    %307 = vector.extract_strided_slice %301 {offsets = [6, 0], sizes = [2, 32], strides = [1, 1]} : vector<8x32xf32> to vector<2x32xf32>
    %308 = arith.addf %306, %307 : vector<2x32xf32>
    %cst_86 = arith.constant dense<0.000000e+00> : vector<2x32xf32>
    %309 = tpu.matmul %308, %249, %cst_86 {dimension_numbers = #tpu.dot_dimension_numbers<[1], [0], [0], [1], [0, 0, 1, 1], [], []>} : vector<2x32xf32>, vector<32x32xf32>, vector<2x32xf32> -> vector<2x32xf32>
    %310 = arith.addf %247, %309 : vector<2x32xf32>
    %311 = vector.broadcast %255 : vector<1x32xf32> to vector<2x32xf32>
    %312 = arith.addf %310, %311 : vector<2x32xf32>
    %cst_87 = arith.constant dense<0.000000e+00> : vector<2xf32>
    %313 = vector.multi_reduction <add>, %312, %cst_87 [1] : vector<2x32xf32> to vector<2xf32>
    %314 = vector.shape_cast %313 : vector<2xf32> to vector<2x1xf32>
    %cst_88 = arith.constant 3.200000e+01 : f32
    %315 = vector.broadcast %cst_88 : f32 to vector<2x1xf32>
    %316 = arith.divf %314, %315 : vector<2x1xf32>
    %317 = vector.broadcast %316 : vector<2x1xf32> to vector<2x32xf32>
    %318 = arith.subf %312, %317 : vector<2x32xf32>
    %319 = arith.mulf %318, %318 : vector<2x32xf32>
    %cst_89 = arith.constant dense<0.000000e+00> : vector<2xf32>
    %320 = vector.multi_reduction <add>, %319, %cst_89 [1] : vector<2x32xf32> to vector<2xf32>
    %321 = vector.shape_cast %320 : vector<2xf32> to vector<2x1xf32>
    %cst_90 = arith.constant 3.200000e+01 : f32
    %322 = vector.broadcast %cst_90 : f32 to vector<2x1xf32>
    %323 = arith.divf %321, %322 : vector<2x1xf32>
    %cst_91 = arith.constant 9.99999974E-6 : f32
    %324 = vector.broadcast %cst_91 : f32 to vector<2x1xf32>
    %325 = arith.addf %323, %324 : vector<2x1xf32>
    %326 = math.rsqrt %325 : vector<2x1xf32>
    %327 = vector.broadcast %326 : vector<2x1xf32> to vector<2x32xf32>
    %328 = arith.mulf %318, %327 : vector<2x32xf32>
    %329 = vector.broadcast %258 : vector<1x32xf32> to vector<2x32xf32>
    %330 = arith.mulf %328, %329 : vector<2x32xf32>
    %331 = vector.broadcast %259 : vector<1x32xf32> to vector<2x32xf32>
    %332 = arith.addf %330, %331 : vector<2x32xf32>
    %cst_92 = arith.constant dense<0.000000e+00> : vector<2x64xf32>
    %333 = tpu.matmul %332, %250, %cst_92 {dimension_numbers = #tpu.dot_dimension_numbers<[1], [0], [0], [1], [0, 0, 1, 1], [], []>} : vector<2x32xf32>, vector<32x64xf32>, vector<2x64xf32> -> vector<2x64xf32>
    %334 = vector.broadcast %254 : vector<1x64xf32> to vector<2x64xf32>
    %335 = arith.addf %333, %334 : vector<2x64xf32>
    %336 = arith.mulf %335, %335 : vector<2x64xf32>
    %337 = arith.mulf %335, %336 : vector<2x64xf32>
    %cst_93 = arith.constant 4.471500e-02 : f32
    %338 = vector.broadcast %cst_93 : f32 to vector<2x64xf32>
    %339 = arith.mulf %338, %337 : vector<2x64xf32>
    %340 = arith.addf %335, %339 : vector<2x64xf32>
    %cst_94 = arith.constant 0.797884583 : f32
    %341 = vector.broadcast %cst_94 : f32 to vector<2x64xf32>
    %342 = arith.mulf %341, %340 : vector<2x64xf32>
    %343 = math.tanh %342 : vector<2x64xf32>
    %cst_95 = arith.constant 1.000000e+00 : f32
    %344 = vector.broadcast %cst_95 : f32 to vector<2x64xf32>
    %345 = arith.addf %344, %343 : vector<2x64xf32>
    %cst_96 = arith.constant 5.000000e-01 : f32
    %346 = vector.broadcast %cst_96 : f32 to vector<2x64xf32>
    %347 = arith.mulf %346, %345 : vector<2x64xf32>
    %348 = arith.mulf %335, %347 : vector<2x64xf32>
    %cst_97 = arith.constant dense<0.000000e+00> : vector<2x32xf32>
    %349 = tpu.matmul %348, %251, %cst_97 {dimension_numbers = #tpu.dot_dimension_numbers<[1], [0], [0], [1], [0, 0, 1, 1], [], []>} : vector<2x64xf32>, vector<64x32xf32>, vector<2x32xf32> -> vector<2x32xf32>
    %350 = arith.addf %312, %349 : vector<2x32xf32>
    %351 = vector.broadcast %260 : vector<1x32xf32> to vector<2x32xf32>
    %352 = arith.addf %350, %351 : vector<2x32xf32>
    %c168_98 = arith.constant 168 : index
    %c0_99 = arith.constant 0 : index
    %353 = vector.load %arg1[%c168_98, %c0_99] : memref<496x128xf32, #tpu.memory_space<vmem>>, vector<32x96xf32>
    %c200_100 = arith.constant 200 : index
    %c0_101 = arith.constant 0 : index
    %354 = vector.load %arg1[%c200_100, %c0_101] : memref<496x128xf32, #tpu.memory_space<vmem>>, vector<32x32xf32>
    %c232_102 = arith.constant 232 : index
    %c0_103 = arith.constant 0 : index
    %355 = vector.load %arg1[%c232_102, %c0_103] : memref<496x128xf32, #tpu.memory_space<vmem>>, vector<32x64xf32>
    %c264_104 = arith.constant 264 : index
    %c0_105 = arith.constant 0 : index
    %356 = vector.load %arg1[%c264_104, %c0_105] : memref<496x128xf32, #tpu.memory_space<vmem>>, vector<64x32xf32>
    %c328_106 = arith.constant 328 : index
    %c0_107 = arith.constant 0 : index
    %357 = vector.load %arg1[%c328_106, %c0_107] : memref<496x128xf32, #tpu.memory_space<vmem>>, vector<8x128xf32>
    %358 = vector.extract_strided_slice %357 {offsets = [0, 0], sizes = [1, 96], strides = [1, 1]} : vector<8x128xf32> to vector<1x96xf32>
    %359 = vector.extract_strided_slice %357 {offsets = [1, 0], sizes = [1, 64], strides = [1, 1]} : vector<8x128xf32> to vector<1x64xf32>
    %360 = vector.extract_strided_slice %357 {offsets = [2, 0], sizes = [1, 32], strides = [1, 1]} : vector<8x128xf32> to vector<1x32xf32>
    %361 = vector.extract_strided_slice %357 {offsets = [3, 0], sizes = [1, 32], strides = [1, 1]} : vector<8x128xf32> to vector<1x32xf32>
    %362 = vector.extract_strided_slice %357 {offsets = [4, 0], sizes = [1, 32], strides = [1, 1]} : vector<8x128xf32> to vector<1x32xf32>
    %363 = vector.extract_strided_slice %357 {offsets = [5, 0], sizes = [1, 32], strides = [1, 1]} : vector<8x128xf32> to vector<1x32xf32>
    %364 = vector.extract_strided_slice %357 {offsets = [6, 0], sizes = [1, 32], strides = [1, 1]} : vector<8x128xf32> to vector<1x32xf32>
    %365 = vector.extract_strided_slice %357 {offsets = [7, 0], sizes = [1, 32], strides = [1, 1]} : vector<8x128xf32> to vector<1x32xf32>
    %cst_108 = arith.constant dense<0.000000e+00> : vector<2xf32>
    %366 = vector.multi_reduction <add>, %352, %cst_108 [1] : vector<2x32xf32> to vector<2xf32>
    %367 = vector.shape_cast %366 : vector<2xf32> to vector<2x1xf32>
    %cst_109 = arith.constant 3.200000e+01 : f32
    %368 = vector.broadcast %cst_109 : f32 to vector<2x1xf32>
    %369 = arith.divf %367, %368 : vector<2x1xf32>
    %370 = vector.broadcast %369 : vector<2x1xf32> to vector<2x32xf32>
    %371 = arith.subf %352, %370 : vector<2x32xf32>
    %372 = arith.mulf %371, %371 : vector<2x32xf32>
    %cst_110 = arith.constant dense<0.000000e+00> : vector<2xf32>
    %373 = vector.multi_reduction <add>, %372, %cst_110 [1] : vector<2x32xf32> to vector<2xf32>
    %374 = vector.shape_cast %373 : vector<2xf32> to vector<2x1xf32>
    %cst_111 = arith.constant 3.200000e+01 : f32
    %375 = vector.broadcast %cst_111 : f32 to vector<2x1xf32>
    %376 = arith.divf %374, %375 : vector<2x1xf32>
    %cst_112 = arith.constant 9.99999974E-6 : f32
    %377 = vector.broadcast %cst_112 : f32 to vector<2x1xf32>
    %378 = arith.addf %376, %377 : vector<2x1xf32>
    %379 = math.rsqrt %378 : vector<2x1xf32>
    %380 = vector.broadcast %379 : vector<2x1xf32> to vector<2x32xf32>
    %381 = arith.mulf %371, %380 : vector<2x32xf32>
    %382 = vector.broadcast %361 : vector<1x32xf32> to vector<2x32xf32>
    %383 = arith.mulf %381, %382 : vector<2x32xf32>
    %384 = vector.broadcast %362 : vector<1x32xf32> to vector<2x32xf32>
    %385 = arith.addf %383, %384 : vector<2x32xf32>
    %cst_113 = arith.constant dense<0.000000e+00> : vector<2x96xf32>
    %386 = tpu.matmul %385, %353, %cst_113 {dimension_numbers = #tpu.dot_dimension_numbers<[1], [0], [0], [1], [0, 0, 1, 1], [], []>} : vector<2x32xf32>, vector<32x96xf32>, vector<2x96xf32> -> vector<2x96xf32>
    %387 = vector.broadcast %358 : vector<1x96xf32> to vector<2x96xf32>
    %388 = arith.addf %386, %387 : vector<2x96xf32>
    %389 = vector.extract_strided_slice %388 {offsets = [0, 0], sizes = [2, 32], strides = [1, 1]} : vector<2x96xf32> to vector<2x32xf32>
    %390 = vector.extract_strided_slice %388 {offsets = [0, 32], sizes = [2, 32], strides = [1, 1]} : vector<2x96xf32> to vector<2x32xf32>
    %391 = vector.extract_strided_slice %388 {offsets = [0, 64], sizes = [2, 32], strides = [1, 1]} : vector<2x96xf32> to vector<2x32xf32>
    %392 = tpu.concatenate %389, %389, %389, %389 in 0 : vector<2x32xf32>, vector<2x32xf32>, vector<2x32xf32>, vector<2x32xf32> -> vector<8x32xf32>
    %393 = arith.mulf %392, %7 : vector<8x32xf32>
    %cst_114 = arith.constant dense<0.000000e+00> : vector<8x2xf32>
    %394 = tpu.matmul %393, %390, %cst_114 {dimension_numbers = #tpu.dot_dimension_numbers<[1], [1], [0], [0], [0, 0, 1, 0], [], []>} : vector<8x32xf32>, vector<2x32xf32>, vector<8x2xf32> -> vector<8x2xf32>
    %cst_115 = arith.constant dense<0xFF800000> : vector<8xf32>
    %395 = vector.multi_reduction <maximumf>, %394, %cst_115 [1] : vector<8x2xf32> to vector<8xf32>
    %396 = vector.shape_cast %395 : vector<8xf32> to vector<8x1xf32>
    %397 = vector.broadcast %396 : vector<8x1xf32> to vector<8x2xf32>
    %398 = arith.subf %394, %397 : vector<8x2xf32>
    %399 = math.exp %398 : vector<8x2xf32>
    %cst_116 = arith.constant dense<0.000000e+00> : vector<8xf32>
    %400 = vector.multi_reduction <add>, %399, %cst_116 [1] : vector<8x2xf32> to vector<8xf32>
    %401 = vector.shape_cast %400 : vector<8xf32> to vector<8x1xf32>
    %402 = tpu.reciprocal %401 {approx = true} : vector<8x1xf32> -> vector<8x1xf32>
    %403 = vector.broadcast %402 : vector<8x1xf32> to vector<8x2xf32>
    %404 = arith.mulf %399, %403 : vector<8x2xf32>
    %cst_117 = arith.constant dense<0.000000e+00> : vector<8x32xf32>
    %405 = tpu.matmul %404, %391, %cst_117 {dimension_numbers = #tpu.dot_dimension_numbers<[1], [0], [0], [1], [0, 0, 1, 1], [], []>} : vector<8x2xf32>, vector<2x32xf32>, vector<8x32xf32> -> vector<8x32xf32>
    %406 = arith.mulf %405, %7 : vector<8x32xf32>
    %407 = vector.extract_strided_slice %406 {offsets = [0, 0], sizes = [2, 32], strides = [1, 1]} : vector<8x32xf32> to vector<2x32xf32>
    %408 = vector.extract_strided_slice %406 {offsets = [2, 0], sizes = [2, 32], strides = [1, 1]} : vector<8x32xf32> to vector<2x32xf32>
    %409 = arith.addf %407, %408 : vector<2x32xf32>
    %410 = vector.extract_strided_slice %406 {offsets = [4, 0], sizes = [2, 32], strides = [1, 1]} : vector<8x32xf32> to vector<2x32xf32>
    %411 = arith.addf %409, %410 : vector<2x32xf32>
    %412 = vector.extract_strided_slice %406 {offsets = [6, 0], sizes = [2, 32], strides = [1, 1]} : vector<8x32xf32> to vector<2x32xf32>
    %413 = arith.addf %411, %412 : vector<2x32xf32>
    %cst_118 = arith.constant dense<0.000000e+00> : vector<2x32xf32>
    %414 = tpu.matmul %413, %354, %cst_118 {dimension_numbers = #tpu.dot_dimension_numbers<[1], [0], [0], [1], [0, 0, 1, 1], [], []>} : vector<2x32xf32>, vector<32x32xf32>, vector<2x32xf32> -> vector<2x32xf32>
    %415 = arith.addf %352, %414 : vector<2x32xf32>
    %416 = vector.broadcast %360 : vector<1x32xf32> to vector<2x32xf32>
    %417 = arith.addf %415, %416 : vector<2x32xf32>
    %cst_119 = arith.constant dense<0.000000e+00> : vector<2xf32>
    %418 = vector.multi_reduction <add>, %417, %cst_119 [1] : vector<2x32xf32> to vector<2xf32>
    %419 = vector.shape_cast %418 : vector<2xf32> to vector<2x1xf32>
    %cst_120 = arith.constant 3.200000e+01 : f32
    %420 = vector.broadcast %cst_120 : f32 to vector<2x1xf32>
    %421 = arith.divf %419, %420 : vector<2x1xf32>
    %422 = vector.broadcast %421 : vector<2x1xf32> to vector<2x32xf32>
    %423 = arith.subf %417, %422 : vector<2x32xf32>
    %424 = arith.mulf %423, %423 : vector<2x32xf32>
    %cst_121 = arith.constant dense<0.000000e+00> : vector<2xf32>
    %425 = vector.multi_reduction <add>, %424, %cst_121 [1] : vector<2x32xf32> to vector<2xf32>
    %426 = vector.shape_cast %425 : vector<2xf32> to vector<2x1xf32>
    %cst_122 = arith.constant 3.200000e+01 : f32
    %427 = vector.broadcast %cst_122 : f32 to vector<2x1xf32>
    %428 = arith.divf %426, %427 : vector<2x1xf32>
    %cst_123 = arith.constant 9.99999974E-6 : f32
    %429 = vector.broadcast %cst_123 : f32 to vector<2x1xf32>
    %430 = arith.addf %428, %429 : vector<2x1xf32>
    %431 = math.rsqrt %430 : vector<2x1xf32>
    %432 = vector.broadcast %431 : vector<2x1xf32> to vector<2x32xf32>
    %433 = arith.mulf %423, %432 : vector<2x32xf32>
    %434 = vector.broadcast %363 : vector<1x32xf32> to vector<2x32xf32>
    %435 = arith.mulf %433, %434 : vector<2x32xf32>
    %436 = vector.broadcast %364 : vector<1x32xf32> to vector<2x32xf32>
    %437 = arith.addf %435, %436 : vector<2x32xf32>
    %cst_124 = arith.constant dense<0.000000e+00> : vector<2x64xf32>
    %438 = tpu.matmul %437, %355, %cst_124 {dimension_numbers = #tpu.dot_dimension_numbers<[1], [0], [0], [1], [0, 0, 1, 1], [], []>} : vector<2x32xf32>, vector<32x64xf32>, vector<2x64xf32> -> vector<2x64xf32>
    %439 = vector.broadcast %359 : vector<1x64xf32> to vector<2x64xf32>
    %440 = arith.addf %438, %439 : vector<2x64xf32>
    %441 = arith.mulf %440, %440 : vector<2x64xf32>
    %442 = arith.mulf %440, %441 : vector<2x64xf32>
    %cst_125 = arith.constant 4.471500e-02 : f32
    %443 = vector.broadcast %cst_125 : f32 to vector<2x64xf32>
    %444 = arith.mulf %443, %442 : vector<2x64xf32>
    %445 = arith.addf %440, %444 : vector<2x64xf32>
    %cst_126 = arith.constant 0.797884583 : f32
    %446 = vector.broadcast %cst_126 : f32 to vector<2x64xf32>
    %447 = arith.mulf %446, %445 : vector<2x64xf32>
    %448 = math.tanh %447 : vector<2x64xf32>
    %cst_127 = arith.constant 1.000000e+00 : f32
    %449 = vector.broadcast %cst_127 : f32 to vector<2x64xf32>
    %450 = arith.addf %449, %448 : vector<2x64xf32>
    %cst_128 = arith.constant 5.000000e-01 : f32
    %451 = vector.broadcast %cst_128 : f32 to vector<2x64xf32>
    %452 = arith.mulf %451, %450 : vector<2x64xf32>
    %453 = arith.mulf %440, %452 : vector<2x64xf32>
    %cst_129 = arith.constant dense<0.000000e+00> : vector<2x32xf32>
    %454 = tpu.matmul %453, %356, %cst_129 {dimension_numbers = #tpu.dot_dimension_numbers<[1], [0], [0], [1], [0, 0, 1, 1], [], []>} : vector<2x64xf32>, vector<64x32xf32>, vector<2x32xf32> -> vector<2x32xf32>
    %455 = arith.addf %417, %454 : vector<2x32xf32>
    %456 = vector.broadcast %365 : vector<1x32xf32> to vector<2x32xf32>
    %457 = arith.addf %455, %456 : vector<2x32xf32>
    %cst_130 = arith.constant dense<0.000000e+00> : vector<2xf32>
    %458 = vector.multi_reduction <add>, %457, %cst_130 [1] : vector<2x32xf32> to vector<2xf32>
    %459 = vector.shape_cast %458 : vector<2xf32> to vector<2x1xf32>
    %cst_131 = arith.constant 3.200000e+01 : f32
    %460 = vector.broadcast %cst_131 : f32 to vector<2x1xf32>
    %461 = arith.divf %459, %460 : vector<2x1xf32>
    %462 = vector.broadcast %461 : vector<2x1xf32> to vector<2x32xf32>
    %463 = arith.subf %457, %462 : vector<2x32xf32>
    %464 = arith.mulf %463, %463 : vector<2x32xf32>
    %cst_132 = arith.constant dense<0.000000e+00> : vector<2xf32>
    %465 = vector.multi_reduction <add>, %464, %cst_132 [1] : vector<2x32xf32> to vector<2xf32>
    %466 = vector.shape_cast %465 : vector<2xf32> to vector<2x1xf32>
    %cst_133 = arith.constant 3.200000e+01 : f32
    %467 = vector.broadcast %cst_133 : f32 to vector<2x1xf32>
    %468 = arith.divf %466, %467 : vector<2x1xf32>
    %cst_134 = arith.constant 9.99999974E-6 : f32
    %469 = vector.broadcast %cst_134 : f32 to vector<2x1xf32>
    %470 = arith.addf %468, %469 : vector<2x1xf32>
    %471 = math.rsqrt %470 : vector<2x1xf32>
    %472 = vector.broadcast %471 : vector<2x1xf32> to vector<2x32xf32>
    %473 = arith.mulf %463, %472 : vector<2x32xf32>
    %474 = vector.broadcast %1 : vector<1x32xf32> to vector<2x32xf32>
    %475 = arith.mulf %473, %474 : vector<2x32xf32>
    %476 = vector.broadcast %2 : vector<1x32xf32> to vector<2x32xf32>
    %477 = arith.addf %475, %476 : vector<2x32xf32>
    %c0_135 = arith.constant 0 : index
    %c0_136 = arith.constant 0 : index
    %478 = vector.load %arg3[%c0_135, %c0_136] : memref<2x32xf32, #tpu.memory_space<vmem>>, vector<2x32xf32>
    tpu.vector_store %arg3[%c0_135, %c0_136], %477 {strides = array<i32>} : memref<2x32xf32, #tpu.memory_space<vmem>>, vector<2x32xf32>,
    %cst_137 = arith.constant dense<0.000000e+00> : vector<2xf32>
    %479 = vector.multi_reduction <add>, %247, %cst_137 [1] : vector<2x32xf32> to vector<2xf32>
    %480 = vector.shape_cast %479 : vector<2xf32> to vector<2x1xf32>
    %cst_138 = arith.constant 3.200000e+01 : f32
    %481 = vector.broadcast %cst_138 : f32 to vector<2x1xf32>
    %482 = arith.divf %480, %481 : vector<2x1xf32>
    %483 = vector.broadcast %482 : vector<2x1xf32> to vector<2x32xf32>
    %484 = arith.subf %247, %483 : vector<2x32xf32>
    %485 = arith.mulf %484, %484 : vector<2x32xf32>
    %cst_139 = arith.constant dense<0.000000e+00> : vector<2xf32>
    %486 = vector.multi_reduction <add>, %485, %cst_139 [1] : vector<2x32xf32> to vector<2xf32>
    %487 = vector.shape_cast %486 : vector<2xf32> to vector<2x1xf32>
    %cst_140 = arith.constant 3.200000e+01 : f32
    %488 = vector.broadcast %cst_140 : f32 to vector<2x1xf32>
    %489 = arith.divf %487, %488 : vector<2x1xf32>
    %cst_141 = arith.constant 9.99999974E-6 : f32
    %490 = vector.broadcast %cst_141 : f32 to vector<2x1xf32>
    %491 = arith.addf %489, %490 : vector<2x1xf32>
    %492 = math.rsqrt %491 : vector<2x1xf32>
    %493 = vector.broadcast %492 : vector<2x1xf32> to vector<2x32xf32>
    %494 = arith.mulf %484, %493 : vector<2x32xf32>
    %495 = vector.broadcast %3 : vector<1x32xf32> to vector<2x32xf32>
    %496 = arith.mulf %494, %495 : vector<2x32xf32>
    %497 = vector.broadcast %4 : vector<1x32xf32> to vector<2x32xf32>
    %498 = arith.addf %496, %497 : vector<2x32xf32>
    %c0_142 = arith.constant 0 : index
    %c0_143 = arith.constant 0 : index
    %499 = vector.load %arg2[%c0_142, %c0_143] : memref<2x32xf32, #tpu.memory_space<vmem>>, vector<2x32xf32>
    tpu.vector_store %arg2[%c0_142, %c0_143], %498 {strides = array<i32>} : memref<2x32xf32, #tpu.memory_space<vmem>>, vector<2x32xf32>,
    return
  }
}

</mosaic_0001>

<bundles_post_ra>
// kernel: forward.1
= control target key start
LH: loop header
LB: loop body
LE: loop exit
PB: predicated region body
PF: predicated region fallthrough
CT: control target
= control target key end

     0   :  { %9 = vsyncpa [#allocation3], 0  ;;  %s4345_s0 = inlined_call_operand.hbm [shape: f32[16,32], index: 0, kind: input, shape index: {}]   ;;  %s4346_s1 = inlined_call_operand.hbm [shape: f32[496,128], index: 1, kind: input, shape index: {}]   ;;  %s4347_s2 = inlined_call_operand.hbm [shape: f32[2,32], index: 2, kind: output, shape index: {0}]   ;;  %s4348_s3 = inlined_call_operand.hbm [shape: f32[2,32], index: 3, kind: output, shape index: {1}]  }
   0x1   :  { %10 = vsyncpa [#allocation6], 0 }
   0x2   :  { %11 = vsyncpa [#allocation4], 0 }
   0x3   :  { %12 = vsyncpa [#allocation9], 0  ;;  %s3675_s12 = smov [#allocation2]  }
   0x4   :  { %s18_s13 = sshll.u32 %s3675_s12, 4  ;;  %s19_s13 = int_to_ptr.vmem [resolvable:$true] %s18_s13 }
   0x5   :  { %s3595_s14 = scalar_lea.vmem %s19_s13, 256  ;;  %p3600_p1 = scmp.lt.s32.totalorder %s19_s13, %s19_s13 }
   0x6   :  { %p3596_p0 = scmp.ne.s32.totalorder %s19_s13, %s3595_s14  ;;  %p3601_p2 = scmp.lt.s32.totalorder %s3595_s14, %s3595_s14 }
   0x8   :  { %p3602_p3 = por %p3601_p2, %p3600_p1 }
   0xa   :  { %p3603_p4 = pnand %p3602_p3, %p3596_p0 }
   0xc   :  { %3606 = shalt.err (!%p3603_p4)
}
   0xd   :  { %s3676_s15 = smov 128   ;;  %s3677_s16 = smov 8  }
   0xe   :  { %24 = dma.hbm_to_vmem [thread:$0]  %s4345_s0, 256, %s19_s13, [#allocation3], %s3676_s15, %s3676_s15, %s3677_s16  }
   0xf   :  { %s3678_s19 = smov [#allocation5]  }
  0x10   :  { %s30_s20 = sshll.u32 %s3678_s19, 4  ;;  %s31_s20 = int_to_ptr.vmem [resolvable:$true] %s30_s20 }
  0x11   :  { %s3615_s21 = scalar_lea.vmem %s31_s20, 7936  ;;  %p3620_p6 = scmp.lt.s32.totalorder %s31_s20, %s31_s20 }
  0x12   :  { %p3616_p5 = scmp.ne.s32.totalorder %s31_s20, %s3615_s21  ;;  %p3621_p7 = scmp.lt.s32.totalorder %s3615_s21, %s3615_s21 }
  0x14   :  { %p3622_p8 = por %p3621_p7, %p3620_p6 }
  0x16   :  { %p3623_p9 = pnand %p3622_p8, %p3616_p5 }
  0x18   :  { %3626 = shalt.err (!%p3623_p9)
}
  0x19   :  { %36 = dma.hbm_to_vmem [thread:$0]  %s4346_s1, 7936, %s31_s20, [#allocation6], %s3676_s15, %s3676_s15, %s3677_s16  }
  0x1a   :  { %3667 = dma.done.wait [#allocation3], 256  }
  0x1b   :  { %3668 = vsyncadd [#allocation3], 4294967040 }
  0x1c   :  { %3669 = dma.done.wait [#allocation6], 7936  }
  0x1d   :  { %3670 = vsyncadd [#allocation6], 4294959360  ;;  %v44_v0 = vld [vmem:[#allocation5 + $0x158] sm:$0xff]  ;;  %v63_v1 = vld [vmem:[#allocation2] sm:$0xff]  ;;  %vm90_vm0 = vcmask 261120   ;;  %v118_v29 = vlaneseq  ;;  %s3679_s0 = smov 96  }
  0x1e   :  { %v45_v2 = vld [vmem:[#allocation5 + $0x160] sm:$0xff]  ;;  %v65_v3 = vadd.f32 %v63_v1, %v44_v0  ;;  %v64_v4 = vld [vmem:[#allocation2 + $0x8] sm:$0xff]  ;;  %v71_v21 = vld [vmem:[#allocation5 + $0x10] sm:$0xff]  ;;  %vm362_vm1 = vcmask 130048   ;;  %s3680_s1 = smov 64   ;;  %vm830_vm2 = vcmask 523264  }
  0x1f   :  { %v66_v5 = vadd.f32 %v64_v4, %v45_v2  ;;  %v72_v20 = vld [vmem:[#allocation5 + $0x18] sm:$0xff]  ;;  %v70_v22 = vld [vmem:[#allocation5 + $0x8] sm:$0xff]  ;;  %v69_v23 = vld [vmem:[#allocation5] sm:$0xff]  ;;  %v3723_v31 = vshrl.u32 %v118_v29, 7  ;;  %vm1811_vm3 = vcmask 1040384   ;;  %vm1813_vm4 = vcmask 254976  }
  0x20   :  { %v3711_v6 = vmul.f32 2.0, %v65_v3  ;;  %3139 = vmatprep.subr.mxu1 %v72_v20  ;;  %v3728_v33 = vld [vmem:[#allocation5 + $0xa0] sm:$0xff]  ;;  %v3756_v50 = vld [vmem:[#allocation5 + $0x168] sm:$0xff]  ;;  %v3771_v55 = vld [vmem:[#allocation5 + $0x170] sm:$0xff]  ;;  %vm3682_vm5 = vmmov 0   ;;  %vm1909_vm6 = vcmask 1041408  }
  0x21   :  { %v3713_v7 = vmul.f32 2.0, %v66_v5  ;;  %3140 = vmatpush3.msra.mxu1 %v72_v20  ;;  %v3726_v32 = vsub.s32 3, %v3723_v31  ;;  %v126_v34 = vsub.s32 4, %v3723_v31  ;;  %v3747_v45 = vsub.s32 0, %v3723_v31  ;;  %v3773_v56 = vld [vmem:[#allocation5 + $0x178] sm:$0xff]  ;;  %v3780_v59 = vld [vmem:[#allocation5 + $0x180] sm:$0xff] }
  0x22   :  { %v91_v8 = vsel %vm90_vm0, %v3711_v6, 0.0  ;;  %3141 = vmatprep.subr.mxu1 %v71_v21  ;;  %v3783_v60 = vld [vmem:[#allocation5 + $0x188] sm:$0xff]  ;;  %v3790_v63 = vld [vmem:[#allocation5 + $0x190] sm:$0xff]  ;;  %v3793_v0 = vld [vmem:[#allocation5 + $0x198] sm:$0xff]  ;;  %vm1911_vm7 = vcmask 1043456   ;;  %vm1913_vm8 = vcmask 1045504  }
  0x23   :  { %92 = vadd.xlane.f32.xlu0 %v91_v8  ;;  %v94_v9 = vsel %vm90_vm0, %v3713_v7, 0.0  ;;  %3142 = vmatpush3.msra.mxu1 %v71_v21  ;;  %v3733_v35 = vrot.slane %v3728_v33, %v3726_v32  ;;  %v3738_v38 = vrot.slane %v3728_v33, %v126_v34  ;;  %v3751_v46 = vrot.slane %v3728_v33, %v3747_v45  ;;  %v3800_v3 = vld [vmem:[#allocation5 + $0x1a0] sm:$0xff]  ;;  %v3807_v5 = vld [vmem:[#allocation5 + $0x1b8] sm:$0xff]  ;;  %s3683_s24 = smov [#allocation7]  }
  0x24   :  { %3143 = vmatprep.subr.mxu1 %v70_v22  ;;  %v3820_v20 = vld [vmem:[#allocation5 + $0x1d8] sm:$0xff]  ;;  %vm1993_vm9 = vcmask 15360   ;;  %s2895_s25 = sshll.u32 %s3683_s24, 4  ;;  %s2896_s25 = int_to_ptr.vmem [resolvable:$true] %s2895_s25 }
  0x25   :  { %3144 = vmatpush3.msra.mxu1 %v70_v22  ;;  %s3627_s26 = scalar_lea.vmem %s2896_s25, 32  ;;  %p3632_p11 = scmp.lt.s32.totalorder %s2896_s25, %s2896_s25 }
  0x26   :  { %3145 = vmatprep.subr.mxu1 %v69_v23  ;;  %p3628_p10 = scmp.ne.s32.totalorder %s2896_s25, %s3627_s26  ;;  %p3633_p12 = scmp.lt.s32.totalorder %s3627_s26, %s3627_s26 }
  0x27   :  { %95 = vadd.xlane.f32.xlu0 %v94_v9  ;;  %3146 = vmatpush3.msra.mxu1 %v69_v23  ;;  %v3809_v9 = vld [vmem:[#allocation5 + $0x1b0] sm:$0xff] }
  0x28   :  { %v3823_v23 = vld [vmem:[#allocation5 + $0x1d0] sm:$0xff]  ;;  %p3634_p13 = por %p3633_p12, %p3632_p11 }
  0x2a   :  { %p3635_p0 = pnand %p3634_p13, %p3628_p10 }
  0xac   :  { %v93_v10 = vpop.xlane.xlu0 %92 }
  0xad   :  { %v98_v11 = vmul.f32 0.03125, %v93_v10 }
  0xaf   :  { %v100_v12 = vsub.f32 %v3711_v6, %v98_v11 }
  0xb0   :  { %v96_v13 = vpop.xlane.xlu0 %95 }
  0xb1   :  { %v99_v14 = vmul.f32 0.03125, %v96_v13  ;;  %v102_v15 = vmul.f32 %v100_v12, %v100_v12 }
  0xb3   :  { %v101_v16 = vsub.f32 %v3713_v7, %v99_v14  ;;  %v104_v17 = vsel %vm90_vm0, %v102_v15, 0.0 }
  0xb4   :  { %105 = vadd.xlane.f32.xlu1 %v104_v17 }
  0xb5   :  { %v103_v18 = vmul.f32 %v101_v16, %v101_v16 }
  0xb7   :  { %v107_v19 = vsel %vm90_vm0, %v103_v18, 0.0 }
  0xb8   :  { %108 = vadd.xlane.f32.xlu1 %v107_v19 }
 0x13d   :  { %v106_v24 = vpop.xlane.xlu1 %105 }
 0x13e   :  { %v110_v25 = vmul.f32 0.03125, %v106_v24 }
 0x140   :  { %v112_v26 = vadd.f32 1e-05, %v110_v25 }
 0x141   :  { %v109_v27 = vpop.xlane.xlu1 %108 }
 0x142   :  { %3441 = vrsqrt.f32 %v112_v26  ;;  %v111_v28 = vmul.f32 0.03125, %v109_v27 }
 0x144   :  { %v113_v30 = vadd.f32 1e-05, %v111_v28  ;;  %v3828_v28 = vld [vmem:[#allocation5 + $0x1e8] sm:$0xff] }
 0x146   :  { %3443 = vrsqrt.f32 %v113_v30 }
 0x14f   :  { %v3442_v36 = vpop.eup %3441 }
 0x150   :  { %v116_v37 = vmul.f32 %v3442_v36, %v100_v12  ;;  %v3812_v12 = vld [vmem:[#allocation5 + $0x1c8] sm:$0xff]  ;;  %v3831_v36 = vld [vmem:[#allocation5 + $0x1e0] sm:$0xff] }
 0x152   :  { %v122_v39 = vmul.f32 %v3733_v35, %v116_v37 }
 0x153   :  { %v3444_v40 = vpop.eup %3443 }
 0x154   :  { %v128_v41 = vadd.f32 %v3738_v38, %v122_v39  ;;  %v117_v42 = vmul.f32 %v3444_v40, %v101_v16  ;;  %v3816_v16 = vld [vmem:[#allocation5 + $0x1c0] sm:$0xff] }
 0x156   :  { %3147 = vmatprep.mubr.msk.f32.mxu1 %vm90_vm0, %v128_v41  ;;  %v123_v43 = vmul.f32 %v3733_v35, %v117_v42 }
 0x158   :  { %v129_v44 = vadd.f32 %v3738_v38, %v123_v43 }
 0x15a   :  { %3148 = vmatmul.mubr.msk.f32.vlgmr.msra.gmra.mxu1 %vm90_vm0, %v129_v44 }
 0x21a   :  { %v3149_v47 = vpop.f32.mrf.mxu1 }
 0x21b   :  { %v3754_v48 = vadd.f32 %v3149_v47, %v3751_v46 }
 0x21c   :  { %v206_v49 = vpop.f32.mrf.mxu1 }
 0x21d   :  { %v3759_v51 = vadd.f32 %v206_v49, %v3751_v46  ;;  %227 = vrot.lane.b32.xlu0 %v3754_v48, %s3679_s0  ;;  %v216_v57 = vmul.f32 %v3754_v48, %v3771_v55  ;;  %v218_v61 = vmul.f32 %v3754_v48, %v3780_v59  ;;  %v220_v1 = vmul.f32 %v3754_v48, %v3790_v63 }
 0x21e   :  { %v222_v4 = vmul.f32 %v3754_v48, %v3800_v3 }
 0x21f   :  { %225 = vrot.lane.b32.xlu1 %v3759_v51, %s3679_s0  ;;  %v215_v52 = vmul.f32 %v3759_v51, %v3756_v50  ;;  %v217_v58 = vmul.f32 %v3759_v51, %v3773_v56  ;;  %v219_v62 = vmul.f32 %v3759_v51, %v3783_v60  ;;  %v221_v2 = vmul.f32 %v3759_v51, %v3793_v0 }
 0x221   :  { %3154 = vmatprep.mubr.msk.f32.mxu1 %vm90_vm0, %v215_v52 }
 0x28f   :  { %v228_v53 = vpop.permute.xlu0 %227 }
 0x290   :  { %3150 = vmatprep.subr.msk.mxu1 %vm90_vm0, %v228_v53 }
 0x291   :  { %3151 = vmatpush3.xpose.msk.msra.mxu1 %vm90_vm0, %v228_v53  ;;  %v226_v54 = vpop.permute.xlu1 %225 }
 0x292   :  { %3152 = vmatprep.subr.msk.mxu1 %vm90_vm0, %v226_v54 }
 0x295   :  { %3153 = vmatpush3.xpose.msk.msra.mxu1 %vm90_vm0, %v226_v54 }
 0x298   :  { %3155 = vmatmul.mubr.msk.f32.vlgmr.msra.gmra.mxu1 %vm90_vm0, %v216_v57 }
 0x299   :  { %3157 = vmatprep.mubr.msk.f32.mxu1 %vm90_vm0, %v217_v58 }
 0x29c   :  { %3158 = vmatmul.mubr.msk.f32.gmra.mxu1 %vm90_vm0, %v218_v61 }
 0x29d   :  { %3160 = vmatprep.mubr.msk.f32.mxu1 %vm90_vm0, %v219_v62 }
 0x2a0   :  { %3161 = vmatmul.mubr.msk.f32.gmra.mxu1 %vm90_vm0, %v220_v1 }
 0x2a1   :  { %3163 = vmatprep.mubr.msk.f32.mxu1 %vm90_vm0, %v221_v2 }
 0x2a4   :  { %3164 = vmatmul.mubr.msk.f32.gmra.mxu1 %vm90_vm0, %v222_v4 }
 0x358   :  { %v3156_v8 = vpop.f32.mrf.mxu1 }
 0x359   :  { %v329_v10 = vadd.f32 %v3156_v8, %v3807_v5 }
 0x35a   :  { %v323_v11 = vpop.f32.mrf.mxu1 }
 0x35b   :  { %v324_v13 = vadd.f32 %v323_v11, %v3809_v9  ;;  %v366_v14 = vsel %vm362_vm1, %v329_v10, -inf }
 0x35c   :  { %367 = vmax.xlane.f32.xlu0 %v366_v14  ;;  %v3159_v15 = vpop.f32.mrf.mxu1 }
 0x35d   :  { %v339_v17 = vadd.f32 %v3159_v15, %v3812_v12  ;;  %v363_v18 = vsel %vm362_vm1, %v324_v13, -inf }
 0x35e   :  { %v333_v19 = vpop.f32.mrf.mxu1  ;;  %364 = vmax.xlane.f32.xlu1 %v363_v18 }
 0x35f   :  { %v334_v21 = vadd.f32 %v333_v19, %v3816_v16  ;;  %v372_v26 = vsel %vm362_vm1, %v339_v17, -inf }
 0x360   :  { %v3162_v22 = vpop.f32.mrf.mxu1 }
 0x361   :  { %v349_v24 = vadd.f32 %v3162_v22, %v3820_v20  ;;  %v369_v25 = vsel %vm362_vm1, %v334_v21, -inf }
 0x362   :  { %v343_v27 = vpop.f32.mrf.mxu1  ;;  %370 = vmax.xlane.f32.xlu0 %v369_v25  ;;  %373 = vmax.xlane.f32.xlu1 %v372_v26 }
 0x363   :  { %v344_v29 = vadd.f32 %v343_v27, %v3823_v23  ;;  %v378_v40 = vsel %vm362_vm1, %v349_v24, -inf }
 0x364   :  { %v3165_v30 = vpop.f32.mrf.mxu1 }
 0x365   :  { %v359_v37 = vadd.f32 %v3165_v30, %v3828_v28  ;;  %v375_v39 = vsel %vm362_vm1, %v344_v29, -inf }
 0x366   :  { %v353_v41 = vpop.f32.mrf.mxu1  ;;  %376 = vmax.xlane.f32.xlu0 %v375_v39  ;;  %379 = vmax.xlane.f32.xlu1 %v378_v40 }
 0x367   :  { %v354_v42 = vadd.f32 %v353_v41, %v3831_v36  ;;  %v384_v44 = vsel %vm362_vm1, %v359_v37, -inf }
 0x369   :  { %v381_v43 = vsel %vm362_vm1, %v354_v42, -inf }
 0x36a   :  { %382 = vmax.xlane.f32.xlu0 %v381_v43  ;;  %385 = vmax.xlane.f32.xlu1 %v384_v44 }
 0x3e5   :  { %v368_v47 = vpop.xlane.xlu0 %367 }
 0x3e6   :  { %v388_v49 = vsub.f32 %v329_v10, %v368_v47 }
 0x3e7   :  { %v365_v52 = vpop.xlane.xlu1 %364 }
 0x3e8   :  { %v397_v53 = vmul.f32 1.442695, %v388_v49  ;;  %v387_v54 = vsub.f32 %v324_v13, %v365_v52 }
 0x3ea   :  { %3445 = vpow2.f32 %v397_v53  ;;  %v395_v57 = vmul.f32 1.442695, %v387_v54 }
 0x3eb   :  { %v371_v58 = vpop.xlane.xlu0 %370  ;;  %v374_v61 = vpop.xlane.xlu1 %373 }
 0x3ec   :  { %3447 = vpow2.f32 %v395_v57  ;;  %v389_v62 = vsub.f32 %v334_v21, %v371_v58  ;;  %v390_v1 = vsub.f32 %v339_v17, %v374_v61 }
 0x3ee   :  { %v399_v2 = vmul.f32 1.442695, %v389_v62  ;;  %v401_v4 = vmul.f32 1.442695, %v390_v1 }
 0x3ef   :  { %v377_v8 = vpop.xlane.xlu0 %376  ;;  %v380_v11 = vpop.xlane.xlu1 %379 }
 0x3f0   :  { %3449 = vpow2.f32 %v399_v2  ;;  %v391_v14 = vsub.f32 %v344_v29, %v377_v8  ;;  %v392_v15 = vsub.f32 %v349_v24, %v380_v11 }
 0x3f1   :  { %3451 = vpow2.f32 %v401_v4 }
 0x3f2   :  { %v403_v18 = vmul.f32 1.442695, %v391_v14  ;;  %v405_v10 = vmul.f32 1.442695, %v392_v15 }
 0x3f3   :  { %v383_v19 = vpop.xlane.xlu0 %382  ;;  %v386_v22 = vpop.xlane.xlu1 %385 }
 0x3f4   :  { %3453 = vpow2.f32 %v403_v18  ;;  %v393_v13 = vsub.f32 %v354_v42, %v383_v19  ;;  %v394_v25 = vsub.f32 %v359_v37, %v386_v22 }
 0x3f5   :  { %3455 = vpow2.f32 %v405_v10 }
 0x3f6   :  { %v407_v26 = vmul.f32 1.442695, %v393_v13  ;;  %v409_v27 = vmul.f32 1.442695, %v394_v25 }
 0x3f7   :  { %v3446_v21 = vpop.eup %3445 }
 0x3f8   :  { %3457 = vpow2.f32 %v407_v26  ;;  %v414_v17 = vsel %vm362_vm1, %v3446_v21, 0.0 }
 0x3f9   :  { %v3448_v30 = vpop.eup %3447  ;;  %3459 = vpow2.f32 %v409_v27  ;;  %415 = vadd.xlane.f32.xlu1 %v414_v17 }
 0x3fa   :  { %v411_v24 = vsel %vm362_vm1, %v3448_v30, 0.0 }
 0x3fb   :  { %412 = vadd.xlane.f32.xlu0 %v411_v24 }
 0x3fd   :  { %v3450_v29 = vpop.eup %3449 }
 0x3fe   :  { %v3452_v39 = vpop.eup %3451  ;;  %v417_v40 = vsel %vm362_vm1, %v3450_v29, 0.0 }
 0x3ff   :  { %418 = vadd.xlane.f32.xlu0 %v417_v40  ;;  %v420_v37 = vsel %vm362_vm1, %v3452_v39, 0.0  ;;  %v74_v40 = vld [vmem:[#allocation5 + $0x28] sm:$0xff] }
 0x400   :  { %421 = vadd.xlane.f32.xlu1 %v420_v37  ;;  %v73_v37 = vld [vmem:[#allocation5 + $0x20] sm:$0xff] }
 0x401   :  { %v3454_v41 = vpop.eup %3453 }
 0x402   :  { %v3456_v42 = vpop.eup %3455  ;;  %v423_v43 = vsel %vm362_vm1, %v3454_v41, 0.0 }
 0x403   :  { %424 = vadd.xlane.f32.xlu0 %v423_v43  ;;  %v426_v44 = vsel %vm362_vm1, %v3456_v42, 0.0 }
 0x404   :  { %427 = vadd.xlane.f32.xlu1 %v426_v44 }
 0x405   :  { %v3458_v47 = vpop.eup %3457 }
 0x406   :  { %v3460_v49 = vpop.eup %3459  ;;  %v429_v52 = vsel %vm362_vm1, %v3458_v47, 0.0 }
 0x407   :  { %430 = vadd.xlane.f32.xlu0 %v429_v52  ;;  %v432_v53 = vsel %vm362_vm1, %v3460_v49, 0.0 }
 0x408   :  { %433 = vadd.xlane.f32.xlu1 %v432_v53 }
 0x419   :  { %451 = vrot.lane.b32.xlu1 %v3759_v51, %s3680_s1 }
 0x41d   :  { %453 = vrot.lane.b32.xlu0 %v3754_v48, %s3680_s1 }
 0x482   :  { %v416_v54 = vpop.xlane.xlu1 %415 }
 0x484   :  { %v413_v57 = vpop.xlane.xlu0 %412 }
 0x485   :  { %3461 = vrcp.f32 %v413_v57 }
 0x486   :  { %3463 = vrcp.f32 %v416_v54 }
 0x488   :  { %v419_v58 = vpop.xlane.xlu0 %418 }
 0x489   :  { %3465 = vrcp.f32 %v419_v58  ;;  %v422_v61 = vpop.xlane.xlu1 %421 }
 0x48a   :  { %3467 = vrcp.f32 %v422_v61 }
 0x48c   :  { %v425_v62 = vpop.xlane.xlu0 %424 }
 0x48d   :  { %3469 = vrcp.f32 %v425_v62  ;;  %v428_v1 = vpop.xlane.xlu1 %427 }
 0x48e   :  { %3471 = vrcp.f32 %v428_v1 }
 0x490   :  { %v431_v2 = vpop.xlane.xlu0 %430 }
 0x491   :  { %3473 = vrcp.f32 %v431_v2  ;;  %v434_v4 = vpop.xlane.xlu1 %433 }
 0x492   :  { %v3462_v8 = vpop.eup %3461  ;;  %3475 = vrcp.f32 %v434_v4 }
 0x493   :  { %v443_v51 = vmul.f32 %v3462_v8, %v3448_v30  ;;  %v3464_v11 = vpop.eup %3463 }
 0x494   :  { %v454_v48 = vpop.permute.xlu0 %453  ;;  %v444_v18 = vmul.f32 %v3464_v11, %v3446_v21 }
 0x495   :  { %3166 = vmatprep.subr.mxu0 %v454_v48  ;;  %3170 = vmatprep.mubr.msk.f32.mxu0 %vm362_vm1, %v443_v51  ;;  %v452_v15 = vpop.permute.xlu1 %451 }
 0x496   :  { %v3466_v14 = vpop.eup %3465  ;;  %3167 = vmatpush3.msra.mxu0 %v454_v48 }
 0x497   :  { %3168 = vmatprep.subr.mxu0 %v452_v15  ;;  %v445_v10 = vmul.f32 %v3466_v14, %v3450_v29  ;;  %v3468_v19 = vpop.eup %3467  ;;  %v76_v29 = vld [vmem:[#allocation5 + $0x38] sm:$0xff] }
 0x498   :  { %3169 = vmatpush3.msra.mxu0 %v452_v15  ;;  %v446_v13 = vmul.f32 %v3468_v19, %v3452_v39  ;;  %3182 = vmatprep.subr.mxu1 %v76_v29  ;;  %v75_v39 = vld [vmem:[#allocation5 + $0x30] sm:$0xff] }
 0x499   :  { %3171 = vmatmul.mubr.msk.f32.vlgmr.msra.gmra.mxu0 %vm362_vm1, %v444_v18  ;;  %3183 = vmatpush3.msra.mxu1 %v76_v29  ;;  %v3870_v18 = vsub.s32 2, %v3723_v31 }
 0x49a   :  { %v3470_v22 = vpop.eup %3469  ;;  %3173 = vmatprep.mubr.msk.f32.mxu0 %vm362_vm1, %v445_v10  ;;  %3184 = vmatprep.subr.mxu1 %v75_v39 }
 0x49b   :  { %v447_v25 = vmul.f32 %v3470_v22, %v3454_v41  ;;  %v3472_v26 = vpop.eup %3471  ;;  %3185 = vmatpush3.msra.mxu1 %v75_v39  ;;  %v3874_v10 = vrot.slane %v3728_v33, %v3870_v18 }
 0x49c   :  { %v448_v17 = vmul.f32 %v3472_v26, %v3456_v42  ;;  %3186 = vmatprep.subr.mxu1 %v74_v40 }
 0x49d   :  { %3174 = vmatmul.mubr.msk.f32.gmra.mxu0 %vm362_vm1, %v446_v13  ;;  %3187 = vmatpush3.msra.mxu1 %v74_v40 }
 0x49e   :  { %v3474_v27 = vpop.eup %3473  ;;  %3176 = vmatprep.mubr.msk.f32.mxu0 %vm362_vm1, %v447_v25  ;;  %3188 = vmatprep.subr.mxu1 %v73_v37 }
 0x49f   :  { %v449_v30 = vmul.f32 %v3474_v27, %v3458_v47  ;;  %v3476_v24 = vpop.eup %3475  ;;  %3189 = vmatpush3.msra.mxu1 %v73_v37 }
 0x4a0   :  { %v450_v21 = vmul.f32 %v3476_v24, %v3460_v49 }
 0x4a1   :  { %3177 = vmatmul.mubr.msk.f32.gmra.mxu0 %vm362_vm1, %v448_v17 }
 0x4a2   :  { %3179 = vmatprep.mubr.msk.f32.mxu0 %vm362_vm1, %v449_v30 }
 0x4a5   :  { %3180 = vmatmul.mubr.msk.f32.gmra.mxu0 %vm362_vm1, %v450_v21 }
 0x559   :  { %v3172_v41 = vpop.f32.mrf.mxu0 }
 0x55a   :  { %v587_v58 = vmul.f32 %v3172_v41, %v3771_v55 }
 0x55b   :  { %v547_v42 = vpop.f32.mrf.mxu0 }
 0x55c   :  { %v586_v54 = vmul.f32 %v547_v42, %v3756_v50 }
 0x55d   :  { %v3175_v43 = vpop.f32.mrf.mxu0 }
 0x55e   :  { %v589_v52 = vmul.f32 %v3175_v43, %v3780_v59  ;;  %v80_v43 = vld [vmem:[#allocation5 + $0x58] sm:$0xff] }
 0x55f   :  { %v557_v44 = vpop.f32.mrf.mxu0  ;;  %3193 = vmatprep.subr.mxu0 %v80_v43 }
 0x560   :  { %v588_v49 = vmul.f32 %v557_v44, %v3773_v56  ;;  %v595_v2 = vadd.f32 %v589_v52, %v587_v58  ;;  %v79_v44 = vld [vmem:[#allocation5 + $0x50] sm:$0xff]  ;;  %3194 = vmatpush3.msra.mxu0 %v80_v43 }
 0x561   :  { %v3178_v47 = vpop.f32.mrf.mxu0  ;;  %3195 = vmatprep.subr.mxu0 %v79_v44 }
 0x562   :  { %v591_v61 = vmul.f32 %v3178_v47, %v3790_v63  ;;  %v594_v1 = vadd.f32 %v588_v49, %v586_v54  ;;  %v78_v47 = vld [vmem:[#allocation5 + $0x48] sm:$0xff]  ;;  %3196 = vmatpush3.msra.mxu0 %v79_v44  ;;  %v77_v49 = vld [vmem:[#allocation5 + $0x40] sm:$0xff] }
 0x563   :  { %v567_v53 = vpop.f32.mrf.mxu0  ;;  %3197 = vmatprep.subr.mxu0 %v78_v47 }
 0x564   :  { %v590_v57 = vmul.f32 %v567_v53, %v3783_v60  ;;  %v597_v48 = vadd.f32 %v595_v2, %v591_v61  ;;  %3198 = vmatpush3.msra.mxu0 %v78_v47 }
 0x565   :  { %v3181_v62 = vpop.f32.mrf.mxu0  ;;  %3199 = vmatprep.subr.mxu0 %v77_v49 }
 0x566   :  { %v593_v4 = vmul.f32 %v3181_v62, %v3800_v3  ;;  %v596_v51 = vadd.f32 %v594_v1, %v590_v57  ;;  %3200 = vmatpush3.msra.mxu0 %v77_v49  ;;  %v717_v62 = vsub.s32 5, %v3723_v31 }
 0x567   :  { %v577_v8 = vpop.f32.mrf.mxu0 }
 0x568   :  { %v592_v11 = vmul.f32 %v577_v8, %v3793_v0  ;;  %v599_v15 = vadd.f32 %v597_v48, %v593_v4  ;;  %v3896_v2 = vrot.slane %v3728_v33, %v717_v62  ;;  %v723_v4 = vsub.s32 6, %v3723_v31 }
 0x56a   :  { %v598_v14 = vadd.f32 %v596_v51, %v592_v11 }
 0x56c   :  { %3190 = vmatprep.mubr.msk.f32.mxu1 %vm90_vm0, %v598_v14  ;;  %v3903_v14 = vrot.slane %v3728_v33, %v723_v4 }
 0x56d   :  { %3191 = vmatmul.mubr.msk.f32.vlgmr.msra.gmra.mxu1 %vm90_vm0, %v599_v15 }
 0x62d   :  { %v3192_v19 = vpop.f32.mrf.mxu1 }
 0x62e   :  { %v682_v22 = vadd.f32 %v3192_v19, %v3713_v7 }
 0x62f   :  { %v672_v13 = vpop.f32.mrf.mxu1 }
 0x630   :  { %v3878_v25 = vadd.f32 %v3874_v10, %v682_v22  ;;  %v681_v26 = vadd.f32 %v672_v13, %v3711_v6  ;;  %v88_v13 = vld [vmem:[#allocation5 + $0x98] sm:$0xff] }
 0x631   :  { %3204 = vmatprep.subr.mxu1 %v88_v13 }
 0x632   :  { %v3882_v27 = vadd.f32 %v3874_v10, %v681_v26  ;;  %v692_v17 = vsel %vm90_vm0, %v3878_v25, 0.0  ;;  %3205 = vmatpush3.msra.mxu1 %v88_v13  ;;  %v87_v26 = vld [vmem:[#allocation5 + $0x90] sm:$0xff]  ;;  %v916_v13 = vsub.s32 7, %v3723_v31 }
 0x633   :  { %693 = vadd.xlane.f32.xlu0 %v692_v17  ;;  %3206 = vmatprep.subr.mxu1 %v87_v26  ;;  %v86_v17 = vld [vmem:[#allocation5 + $0x88] sm:$0xff] }
 0x634   :  { %v689_v30 = vsel %vm90_vm0, %v3882_v27, 0.0  ;;  %3207 = vmatpush3.msra.mxu1 %v87_v26  ;;  %v3925_v26 = vrot.slane %v3728_v33, %v916_v13 }
 0x635   :  { %690 = vadd.xlane.f32.xlu1 %v689_v30  ;;  %3208 = vmatprep.subr.mxu1 %v86_v17  ;;  %v85_v30 = vld [vmem:[#allocation5 + $0x80] sm:$0xff] }
 0x636   :  { %3209 = vmatpush3.msra.mxu1 %v86_v17 }
 0x637   :  { %3210 = vmatprep.subr.mxu1 %v85_v30 }
 0x638   :  { %3211 = vmatpush3.msra.mxu1 %v85_v30 }
 0x6bc   :  { %v694_v24 = vpop.xlane.xlu0 %693 }
 0x6bd   :  { %v696_v21 = vmul.f32 0.03125, %v694_v24  ;;  %v84_v24 = vld [vmem:[#allocation5 + $0x78] sm:$0xff] }
 0x6be   :  { %v691_v7 = vpop.xlane.xlu1 %690  ;;  %3212 = vmatprep.subr.mxu1 %v84_v24 }
 0x6bf   :  { %v698_v29 = vsub.f32 %v3878_v25, %v696_v21  ;;  %v695_v39 = vmul.f32 0.03125, %v691_v7  ;;  %3213 = vmatpush3.msra.mxu1 %v84_v24  ;;  %v83_v21 = vld [vmem:[#allocation5 + $0x70] sm:$0xff]  ;;  %v82_v7 = vld [vmem:[#allocation5 + $0x68] sm:$0xff] }
 0x6c0   :  { %3214 = vmatprep.subr.mxu1 %v83_v21 }
 0x6c1   :  { %v697_v40 = vsub.f32 %v3882_v27, %v695_v39  ;;  %v700_v6 = vmul.f32 %v698_v29, %v698_v29  ;;  %3215 = vmatpush3.msra.mxu1 %v83_v21  ;;  %v3911_v39 = vsub.s32 1, %v3723_v31 }
 0x6c2   :  { %3216 = vmatprep.subr.mxu1 %v82_v7 }
 0x6c3   :  { %v704_v37 = vsel %vm90_vm0, %v700_v6, 0.0  ;;  %v699_v41 = vmul.f32 %v697_v40, %v697_v40  ;;  %3217 = vmatpush3.msra.mxu1 %v82_v7 }
 0x6c4   :  { %705 = vadd.xlane.f32.xlu1 %v704_v37 }
 0x6c5   :  { %v701_v42 = vsel %vm90_vm0, %v699_v41, 0.0 }
 0x6c6   :  { %702 = vadd.xlane.f32.xlu0 %v701_v42 }
 0x74d   :  { %v706_v52 = vpop.xlane.xlu1 %705 }
 0x74e   :  { %v708_v53 = vmul.f32 0.03125, %v706_v52 }
 0x74f   :  { %v703_v54 = vpop.xlane.xlu0 %702 }
 0x750   :  { %v710_v57 = vadd.f32 1e-05, %v708_v53  ;;  %v707_v58 = vmul.f32 0.03125, %v703_v54 }
 0x752   :  { %3477 = vrsqrt.f32 %v710_v57  ;;  %v709_v61 = vadd.f32 1e-05, %v707_v58 }
 0x754   :  { %3479 = vrsqrt.f32 %v709_v61 }
 0x75f   :  { %v3478_v1 = vpop.eup %3477 }
 0x760   :  { %v714_v8 = vmul.f32 %v3478_v1, %v698_v29  ;;  %v81_v29 = vld [vmem:[#allocation5 + $0x60] sm:$0xff] }
 0x761   :  { %v3480_v51 = vpop.eup %3479  ;;  %3218 = vmatprep.subr.mxu1 %v81_v29 }
 0x762   :  { %v713_v11 = vmul.f32 %v3480_v51, %v697_v40  ;;  %v720_v48 = vmul.f32 %v3896_v2, %v714_v8  ;;  %3219 = vmatpush3.msra.mxu1 %v81_v29  ;;  %v3915_v40 = vrot.slane %v3728_v33, %v3911_v39 }
 0x764   :  { %v719_v15 = vmul.f32 %v3896_v2, %v713_v11  ;;  %v726_v22 = vadd.f32 %v3903_v14, %v720_v48 }
 0x766   :  { %v725_v19 = vadd.f32 %v3903_v14, %v719_v15 }
 0x768   :  { %3201 = vmatprep.mubr.msk.f32.mxu0 %vm90_vm0, %v725_v19 }
 0x769   :  { %3202 = vmatmul.mubr.msk.f32.vlgmr.msra.gmra.mxu0 %vm90_vm0, %v726_v22 }
 0x829   :  { %v3203_v6 = vpop.f32.mrf.mxu0 }
 0x82a   :  { %v809_v37 = vadd.f32 %v3203_v6, %v3915_v40 }
 0x82b   :  { %v803_v41 = vpop.f32.mrf.mxu0 }
 0x82c   :  { %v813_v42 = vmul.f32 %v809_v37, %v809_v37  ;;  %v804_v43 = vadd.f32 %v803_v41, %v3915_v40 }
 0x82e   :  { %v815_v44 = vmul.f32 %v813_v42, %v809_v37  ;;  %v812_v47 = vmul.f32 %v804_v43, %v804_v43 }
 0x830   :  { %v817_v49 = vmul.f32 0.044715, %v815_v44  ;;  %v814_v52 = vmul.f32 %v812_v47, %v804_v43 }
 0x832   :  { %v819_v53 = vadd.f32 %v817_v49, %v809_v37  ;;  %v816_v54 = vmul.f32 0.044715, %v814_v52 }
 0x834   :  { %v821_v57 = vmul.f32 0.7978846, %v819_v53  ;;  %v818_v58 = vadd.f32 %v816_v54, %v804_v43  ;;  %v923_v53 = vld [vmem:[#allocation5 + $0xc0] sm:$0xff]  ;;  %v922_v54 = vld [vmem:[#allocation5 + $0xb8] sm:$0xff] }
 0x835   :  { %3223 = vmatprep.subr.mxu0 %v923_v53 }
 0x836   :  { %3481 = vtanh.f32 %v821_v57  ;;  %v820_v61 = vmul.f32 0.7978846, %v818_v58  ;;  %3224 = vmatpush3.msra.mxu0 %v923_v53  ;;  %v921_v57 = vld [vmem:[#allocation5 + $0xb0] sm:$0xff]  ;;  %v920_v58 = vld [vmem:[#allocation5 + $0xa8] sm:$0xff] }
 0x837   :  { %3225 = vmatprep.subr.mxu0 %v922_v54 }
 0x838   :  { %3483 = vtanh.f32 %v820_v61  ;;  %3226 = vmatpush3.msra.mxu0 %v922_v54 }
 0x839   :  { %3227 = vmatprep.subr.mxu0 %v921_v57 }
 0x83a   :  { %3228 = vmatpush3.msra.mxu0 %v921_v57 }
 0x83b   :  { %3229 = vmatprep.subr.mxu0 %v920_v58 }
 0x83c   :  { %3230 = vmatpush3.msra.mxu0 %v920_v58 }
 0x843   :  { %v3482_v1 = vpop.eup %3481 }
 0x844   :  { %v825_v8 = vadd.f32 1.0, %v3482_v1 }
 0x845   :  { %v3484_v51 = vpop.eup %3483 }
 0x846   :  { %v824_v11 = vadd.f32 1.0, %v3484_v51  ;;  %v827_v48 = vmul.f32 0.5, %v825_v8 }
 0x848   :  { %v826_v15 = vmul.f32 0.5, %v824_v11  ;;  %v829_v22 = vmul.f32 %v827_v48, %v809_v37 }
 0x84a   :  { %v828_v19 = vmul.f32 %v826_v15, %v804_v43  ;;  %v3943_v15 = vld [vmem:[#allocation5 + $0x148] sm:$0xff] }
 0x84c   :  { %3220 = vmatprep.mubr.msk.f32.mxu1 %vm830_vm2, %v828_v19 }
 0x84d   :  { %3221 = vmatmul.mubr.msk.f32.vlgmr.msra.gmra.mxu1 %vm830_vm2, %v829_v22  ;;  %v3947_v22 = vrot.slane %v3943_v15, %v3726_v32 }
 0x90d   :  { %v3222_v17 = vpop.f32.mrf.mxu1 }
 0x90e   :  { %v913_v30 = vadd.f32 %v3222_v17, %v3878_v25 }
 0x90f   :  { %v903_v24 = vpop.f32.mrf.mxu1 }
 0x910   :  { %v3929_v21 = vadd.f32 %v3925_v26, %v913_v30  ;;  %v912_v7 = vadd.f32 %v903_v24, %v3882_v27 }
 0x912   :  { %v3933_v29 = vadd.f32 %v3925_v26, %v912_v7  ;;  %v944_v6 = vsel %vm90_vm0, %v3929_v21, 0.0  ;;  %v3952_v7 = vrot.slane %v3943_v15, %v126_v34 }
 0x913   :  { %945 = vadd.xlane.f32.xlu1 %v944_v6 }
 0x914   :  { %v941_v33 = vsel %vm90_vm0, %v3933_v29, 0.0 }
 0x915   :  { %942 = vadd.xlane.f32.xlu0 %v941_v33 }
 0x99c   :  { %v946_v37 = vpop.xlane.xlu1 %945 }
 0x99d   :  { %v948_v41 = vmul.f32 0.03125, %v946_v37 }
 0x99e   :  { %v943_v25 = vpop.xlane.xlu0 %942 }
 0x99f   :  { %v950_v42 = vsub.f32 %v3929_v21, %v948_v41  ;;  %v947_v43 = vmul.f32 0.03125, %v943_v25  ;;  %v3962_v25 = vrot.slane %v3943_v15, %v3747_v45 }
 0x9a1   :  { %v949_v44 = vsub.f32 %v3933_v29, %v947_v43  ;;  %v952_v27 = vmul.f32 %v950_v42, %v950_v42 }
 0x9a3   :  { %v956_v47 = vsel %vm90_vm0, %v952_v27, 0.0  ;;  %v951_v49 = vmul.f32 %v949_v44, %v949_v44 }
 0x9a4   :  { %957 = vadd.xlane.f32.xlu1 %v956_v47 }
 0x9a5   :  { %v953_v52 = vsel %vm90_vm0, %v951_v49, 0.0 }
 0x9a6   :  { %954 = vadd.xlane.f32.xlu0 %v953_v52 }
 0xa2d   :  { %v958_v61 = vpop.xlane.xlu1 %957 }
 0xa2e   :  { %v960_v1 = vmul.f32 0.03125, %v958_v61 }
 0xa2f   :  { %v955_v8 = vpop.xlane.xlu0 %954 }
 0xa30   :  { %v962_v51 = vadd.f32 1e-05, %v960_v1  ;;  %v959_v11 = vmul.f32 0.03125, %v955_v8 }
 0xa32   :  { %3485 = vrsqrt.f32 %v962_v51  ;;  %v961_v48 = vadd.f32 1e-05, %v959_v11 }
 0xa34   :  { %3487 = vrsqrt.f32 %v961_v48 }
 0xa3f   :  { %v3486_v19 = vpop.eup %3485 }
 0xa40   :  { %v966_v17 = vmul.f32 %v3486_v19, %v950_v42 }
 0xa41   :  { %v3488_v30 = vpop.eup %3487 }
 0xa42   :  { %v965_v24 = vmul.f32 %v3488_v30, %v949_v44  ;;  %v972_v6 = vmul.f32 %v3947_v22, %v966_v17 }
 0xa44   :  { %v971_v33 = vmul.f32 %v3947_v22, %v965_v24  ;;  %v978_v41 = vadd.f32 %v3952_v7, %v972_v6 }
 0xa46   :  { %v977_v37 = vadd.f32 %v3952_v7, %v971_v33 }
 0xa48   :  { %3231 = vmatprep.mubr.msk.f32.mxu0 %vm90_vm0, %v977_v37 }
 0xa49   :  { %3232 = vmatmul.mubr.msk.f32.vlgmr.msra.gmra.mxu0 %vm90_vm0, %v978_v41 }
 0xb09   :  { %v3233_v42 = vpop.f32.mrf.mxu0 }
 0xb0a   :  { %v3965_v34 = vadd.f32 %v3233_v42, %v3962_v25 }
 0xb0b   :  { %v1055_v43 = vpop.f32.mrf.mxu0 }
 0xb0c   :  { %v3968_v44 = vadd.f32 %v1055_v43, %v3962_v25  ;;  %1076 = vrot.lane.b32.xlu0 %v3965_v34, %s3679_s0  ;;  %v1065_v52 = vmul.f32 %v3965_v34, %v3771_v55  ;;  %v1069_v55 = vmul.f32 %v3965_v34, %v3790_v63 }
 0xb0e   :  { %1074 = vrot.lane.b32.xlu1 %v3968_v44, %s3679_s0  ;;  %v1064_v27 = vmul.f32 %v3968_v44, %v3756_v50  ;;  %v1066_v53 = vmul.f32 %v3968_v44, %v3773_v56  ;;  %v1067_v50 = vmul.f32 %v3965_v34, %v3780_v59  ;;  %v1068_v54 = vmul.f32 %v3968_v44, %v3783_v60 }
 0xb0f   :  { %v1070_v56 = vmul.f32 %v3968_v44, %v3793_v0  ;;  %v1071_v59 = vmul.f32 %v3965_v34, %v3800_v3 }
 0xb10   :  { %3238 = vmatprep.mubr.msk.f32.mxu0 %vm90_vm0, %v1064_v27 }
 0xb7e   :  { %v1077_v47 = vpop.permute.xlu0 %1076 }
 0xb7f   :  { %3234 = vmatprep.subr.msk.mxu0 %vm90_vm0, %v1077_v47 }
 0xb80   :  { %3235 = vmatpush3.xpose.msk.msra.mxu0 %vm90_vm0, %v1077_v47  ;;  %v1075_v49 = vpop.permute.xlu1 %1074 }
 0xb81   :  { %3236 = vmatprep.subr.msk.mxu0 %vm90_vm0, %v1075_v49 }
 0xb84   :  { %3237 = vmatpush3.xpose.msk.msra.mxu0 %vm90_vm0, %v1075_v49 }
 0xb87   :  { %3239 = vmatmul.mubr.msk.f32.vlgmr.msra.gmra.mxu0 %vm90_vm0, %v1065_v52 }
 0xb88   :  { %3241 = vmatprep.mubr.msk.f32.mxu0 %vm90_vm0, %v1066_v53 }
 0xb8b   :  { %3242 = vmatmul.mubr.msk.f32.gmra.mxu0 %vm90_vm0, %v1067_v50 }
 0xb8c   :  { %3244 = vmatprep.mubr.msk.f32.mxu0 %vm90_vm0, %v1068_v54 }
 0xb8f   :  { %3245 = vmatmul.mubr.msk.f32.gmra.mxu0 %vm90_vm0, %v1069_v55 }
 0xb90   :  { %3247 = vmatprep.mubr.msk.f32.mxu0 %vm90_vm0, %v1070_v56 }
 0xb93   :  { %3248 = vmatmul.mubr.msk.f32.gmra.mxu0 %vm90_vm0, %v1071_v59 }
 0xc47   :  { %v3240_v60 = vpop.f32.mrf.mxu0 }
 0xc48   :  { %v1178_v57 = vadd.f32 %v3240_v60, %v3807_v5 }
 0xc49   :  { %v1172_v58 = vpop.f32.mrf.mxu0 }
 0xc4a   :  { %v1173_v61 = vadd.f32 %v1172_v58, %v3809_v9  ;;  %v1214_v63 = vsel %vm362_vm1, %v1178_v57, -inf }
 0xc4b   :  { %1215 = vmax.xlane.f32.xlu0 %v1214_v63  ;;  %v3243_v1 = vpop.f32.mrf.mxu0 }
 0xc4c   :  { %v1188_v0 = vadd.f32 %v3243_v1, %v3812_v12  ;;  %v1211_v8 = vsel %vm362_vm1, %v1173_v61, -inf }
 0xc4d   :  { %v1182_v51 = vpop.f32.mrf.mxu0  ;;  %1212 = vmax.xlane.f32.xlu1 %v1211_v8 }
 0xc4e   :  { %v1183_v3 = vadd.f32 %v1182_v51, %v3816_v16  ;;  %v1220_v19 = vsel %vm362_vm1, %v1188_v0, -inf }
 0xc4f   :  { %v3246_v11 = vpop.f32.mrf.mxu0 }
 0xc50   :  { %v1198_v48 = vadd.f32 %v3246_v11, %v3820_v20  ;;  %v1217_v5 = vsel %vm362_vm1, %v1183_v3, -inf }
 0xc51   :  { %v1192_v9 = vpop.f32.mrf.mxu0  ;;  %1218 = vmax.xlane.f32.xlu0 %v1217_v5  ;;  %1221 = vmax.xlane.f32.xlu1 %v1220_v19 }
 0xc52   :  { %v1193_v17 = vadd.f32 %v1192_v9, %v3823_v23  ;;  %v1226_v6 = vsel %vm362_vm1, %v1198_v48, -inf }
 0xc53   :  { %v3249_v30 = vpop.f32.mrf.mxu0 }
 0xc54   :  { %v1208_v12 = vadd.f32 %v3249_v30, %v3828_v28  ;;  %v1223_v24 = vsel %vm362_vm1, %v1193_v17, -inf }
 0xc55   :  { %v1202_v16 = vpop.f32.mrf.mxu0  ;;  %1224 = vmax.xlane.f32.xlu0 %v1223_v24  ;;  %1227 = vmax.xlane.f32.xlu1 %v1226_v6 }
 0xc56   :  { %v1203_v20 = vadd.f32 %v1202_v16, %v3831_v36  ;;  %v1232_v37 = vsel %vm362_vm1, %v1208_v12, -inf }
 0xc58   :  { %v1229_v33 = vsel %vm362_vm1, %v1203_v20, -inf }
 0xc59   :  { %1230 = vmax.xlane.f32.xlu0 %v1229_v33  ;;  %1233 = vmax.xlane.f32.xlu1 %v1232_v37 }
 0xcd4   :  { %v1216_v41 = vpop.xlane.xlu0 %1215 }
 0xcd5   :  { %v1236_v23 = vsub.f32 %v1178_v57, %v1216_v41 }
 0xcd6   :  { %v1213_v42 = vpop.xlane.xlu1 %1212 }
 0xcd7   :  { %v1245_v43 = vmul.f32 1.442695, %v1236_v23  ;;  %v1235_v28 = vsub.f32 %v1173_v61, %v1213_v42 }
 0xcd9   :  { %3489 = vpow2.f32 %v1245_v43  ;;  %v1243_v27 = vmul.f32 1.442695, %v1235_v28 }
 0xcda   :  { %v1219_v47 = vpop.xlane.xlu0 %1218  ;;  %v1222_v49 = vpop.xlane.xlu1 %1221 }
 0xcdb   :  { %3491 = vpow2.f32 %v1243_v27  ;;  %v1237_v52 = vsub.f32 %v1183_v3, %v1219_v47  ;;  %v1238_v53 = vsub.f32 %v1188_v0, %v1222_v49 }
 0xcdd   :  { %v1247_v50 = vmul.f32 1.442695, %v1237_v52  ;;  %v1249_v36 = vmul.f32 1.442695, %v1238_v53 }
 0xcde   :  { %v1225_v54 = vpop.xlane.xlu0 %1224  ;;  %v1228_v55 = vpop.xlane.xlu1 %1227 }
 0xcdf   :  { %3493 = vpow2.f32 %v1247_v50  ;;  %v1239_v56 = vsub.f32 %v1193_v17, %v1225_v54  ;;  %v1240_v59 = vsub.f32 %v1198_v48, %v1228_v55 }
 0xce0   :  { %3495 = vpow2.f32 %v1249_v36 }
 0xce1   :  { %v1251_v60 = vmul.f32 1.442695, %v1239_v56  ;;  %v1253_v57 = vmul.f32 1.442695, %v1240_v59 }
 0xce2   :  { %v1231_v58 = vpop.xlane.xlu0 %1230  ;;  %v1234_v63 = vpop.xlane.xlu1 %1233 }
 0xce3   :  { %3497 = vpow2.f32 %v1251_v60  ;;  %v1241_v61 = vsub.f32 %v1203_v20, %v1231_v58  ;;  %v1242_v1 = vsub.f32 %v1208_v12, %v1234_v63 }
 0xce4   :  { %3499 = vpow2.f32 %v1253_v57 }
 0xce5   :  { %v1255_v8 = vmul.f32 1.442695, %v1241_v61  ;;  %v1257_v51 = vmul.f32 1.442695, %v1242_v1 }
 0xce6   :  { %v3490_v3 = vpop.eup %3489 }
 0xce7   :  { %3501 = vpow2.f32 %v1255_v8  ;;  %v1262_v0 = vsel %vm362_vm1, %v3490_v3, 0.0 }
 0xce8   :  { %v3492_v11 = vpop.eup %3491  ;;  %3503 = vpow2.f32 %v1257_v51  ;;  %1263 = vadd.xlane.f32.xlu1 %v1262_v0  ;;  %v4042_v0 = vld [vmem:[#allocation5 + $0xd8] sm:$0xff] }
 0xce9   :  { %v1259_v48 = vsel %vm362_vm1, %v3492_v11, 0.0 }
 0xcea   :  { %1260 = vadd.xlane.f32.xlu0 %v1259_v48  ;;  %v4050_v48 = vld [vmem:[#allocation5 + $0xc8] sm:$0xff] }
 0xcec   :  { %v3494_v5 = vpop.eup %3493 }
 0xced   :  { %v3496_v19 = vpop.eup %3495  ;;  %v1265_v9 = vsel %vm362_vm1, %v3494_v5, 0.0 }
 0xcee   :  { %1266 = vadd.xlane.f32.xlu0 %v1265_v9  ;;  %v1268_v17 = vsel %vm362_vm1, %v3496_v19, 0.0 }
 0xcef   :  { %1269 = vadd.xlane.f32.xlu1 %v1268_v17 }
 0xcf0   :  { %v3498_v30 = vpop.eup %3497 }
 0xcf1   :  { %v3500_v12 = vpop.eup %3499  ;;  %v1271_v24 = vsel %vm362_vm1, %v3498_v30, 0.0 }
 0xcf2   :  { %1272 = vadd.xlane.f32.xlu0 %v1271_v24  ;;  %v1274_v6 = vsel %vm362_vm1, %v3500_v12, 0.0 }
 0xcf3   :  { %1275 = vadd.xlane.f32.xlu1 %v1274_v6  ;;  %v3556_v6 = vld [vmem:[#allocation5 + $0x180] sm:$0xff] }
 0xcf4   :  { %v3502_v16 = vpop.eup %3501 }
 0xcf5   :  { %v3504_v20 = vpop.eup %3503  ;;  %v1277_v33 = vsel %vm362_vm1, %v3502_v16, 0.0 }
 0xcf6   :  { %1278 = vadd.xlane.f32.xlu0 %v1277_v33  ;;  %v1280_v37 = vsel %vm362_vm1, %v3504_v20, 0.0  ;;  %v3557_v33 = vld [vmem:[#allocation5 + $0x168] sm:$0xff] }
 0xcf7   :  { %1281 = vadd.xlane.f32.xlu1 %v1280_v37 }
 0xd08   :  { %1299 = vrot.lane.b32.xlu1 %v3968_v44, %s3680_s1 }
 0xd0c   :  { %1301 = vrot.lane.b32.xlu0 %v3965_v34, %s3680_s1 }
 0xd71   :  { %v1264_v41 = vpop.xlane.xlu1 %1263 }
 0xd73   :  { %v1261_v23 = vpop.xlane.xlu0 %1260 }
 0xd74   :  { %3505 = vrcp.f32 %v1261_v23 }
 0xd75   :  { %3507 = vrcp.f32 %v1264_v41  ;;  %v3558_v41 = vld [vmem:[#allocation5 + $0x188] sm:$0xff] }
 0xd77   :  { %v1267_v42 = vpop.xlane.xlu0 %1266 }
 0xd78   :  { %3509 = vrcp.f32 %v1267_v42  ;;  %v1270_v43 = vpop.xlane.xlu1 %1269  ;;  %v3559_v42 = vld [vmem:[#allocation5 + $0x170] sm:$0xff] }
 0xd79   :  { %3511 = vrcp.f32 %v1270_v43 }
 0xd7b   :  { %v1273_v28 = vpop.xlane.xlu0 %1272 }
 0xd7c   :  { %3513 = vrcp.f32 %v1273_v28  ;;  %v1276_v27 = vpop.xlane.xlu1 %1275  ;;  %v3560_v28 = vld [vmem:[#allocation5 + $0x190] sm:$0xff] }
 0xd7d   :  { %3515 = vrcp.f32 %v1276_v27 }
 0xd7f   :  { %v1279_v47 = vpop.xlane.xlu0 %1278 }
 0xd80   :  { %3517 = vrcp.f32 %v1279_v47  ;;  %v1282_v49 = vpop.xlane.xlu1 %1281 }
 0xd81   :  { %v3506_v52 = vpop.eup %3505  ;;  %3519 = vrcp.f32 %v1282_v49 }
 0xd82   :  { %v1291_v44 = vmul.f32 %v3506_v52, %v3492_v11  ;;  %v3508_v53 = vpop.eup %3507  ;;  %v4046_v11 = vld [vmem:[#allocation5 + $0xd0] sm:$0xff] }
 0xd83   :  { %v1302_v34 = vpop.permute.xlu0 %1301  ;;  %v1292_v54 = vmul.f32 %v3508_v53, %v3490_v3  ;;  %v4038_v3 = vld [vmem:[#allocation5 + $0xe0] sm:$0xff] }
 0xd84   :  { %3250 = vmatprep.subr.mxu1 %v1302_v34  ;;  %3254 = vmatprep.mubr.msk.f32.mxu1 %vm362_vm1, %v1291_v44  ;;  %v1300_v36 = vpop.permute.xlu1 %1299  ;;  %v3561_v44 = vld [vmem:[#allocation5 + $0x1a0] sm:$0xff] }
 0xd85   :  { %v3510_v50 = vpop.eup %3509  ;;  %3251 = vmatpush3.msra.mxu1 %v1302_v34  ;;  %3266 = vmatprep.subr.mxu0 %v4038_v3 }
 0xd86   :  { %3252 = vmatprep.subr.mxu1 %v1300_v36  ;;  %v1293_v55 = vmul.f32 %v3510_v50, %v3494_v5  ;;  %v3512_v56 = vpop.eup %3511  ;;  %3267 = vmatpush3.msra.mxu0 %v4038_v3 }
 0xd87   :  { %3253 = vmatpush3.msra.mxu1 %v1300_v36  ;;  %v1294_v60 = vmul.f32 %v3512_v56, %v3496_v19  ;;  %3268 = vmatprep.subr.mxu0 %v4042_v0  ;;  %v3562_v36 = vld [vmem:[#allocation5 + $0x198] sm:$0xff] }
 0xd88   :  { %3255 = vmatmul.mubr.msk.f32.vlgmr.msra.gmra.mxu1 %vm362_vm1, %v1292_v54  ;;  %3269 = vmatpush3.msra.mxu0 %v4042_v0 }
 0xd89   :  { %v3514_v59 = vpop.eup %3513  ;;  %3257 = vmatprep.mubr.msk.f32.mxu1 %vm362_vm1, %v1293_v55  ;;  %3270 = vmatprep.subr.mxu0 %v4046_v11 }
 0xd8a   :  { %v1295_v57 = vmul.f32 %v3514_v59, %v3498_v30  ;;  %v3516_v58 = vpop.eup %3515  ;;  %3271 = vmatpush3.msra.mxu0 %v4046_v11 }
 0xd8b   :  { %v1296_v61 = vmul.f32 %v3516_v58, %v3500_v12  ;;  %3272 = vmatprep.subr.mxu0 %v4050_v48  ;;  %v3555_v12 = vld [vmem:[#allocation5 + $0x178] sm:$0xff] }
 0xd8c   :  { %3258 = vmatmul.mubr.msk.f32.gmra.mxu1 %vm362_vm1, %v1294_v60  ;;  %3273 = vmatpush3.msra.mxu0 %v4050_v48  ;;  %v4058_v60 = vrot.slane %v3943_v15, %v3870_v18 }
 0xd8d   :  { %v3518_v63 = vpop.eup %3517  ;;  %3260 = vmatprep.mubr.msk.f32.mxu1 %vm362_vm1, %v1295_v57 }
 0xd8e   :  { %v1297_v1 = vmul.f32 %v3518_v63, %v3502_v16  ;;  %v3520_v8 = vpop.eup %3519 }
 0xd8f   :  { %v1298_v51 = vmul.f32 %v3520_v8, %v3504_v20 }
 0xd90   :  { %3261 = vmatmul.mubr.msk.f32.gmra.mxu1 %vm362_vm1, %v1296_v61 }
 0xd91   :  { %3263 = vmatprep.mubr.msk.f32.mxu1 %vm362_vm1, %v1297_v1 }
 0xd94   :  { %3264 = vmatmul.mubr.msk.f32.gmra.mxu1 %vm362_vm1, %v1298_v51 }
 0xe48   :  { %v3256_v5 = vpop.f32.mrf.mxu1 }
 0xe49   :  { %v1435_v43 = vmul.f32 %v3559_v42, %v3256_v5 }
 0xe4a   :  { %v1395_v19 = vpop.f32.mrf.mxu1 }
 0xe4b   :  { %v1434_v37 = vmul.f32 %v3557_v33, %v1395_v19  ;;  %v4078_v33 = vld [vmem:[#allocation5 + $0xf8] sm:$0xff] }
 0xe4c   :  { %v3259_v9 = vpop.f32.mrf.mxu1 }
 0xe4d   :  { %v1437_v16 = vmul.f32 %v3556_v6, %v3259_v9 }
 0xe4e   :  { %v1405_v17 = vpop.f32.mrf.mxu1 }
 0xe4f   :  { %v1436_v24 = vmul.f32 %v3555_v12, %v1405_v17  ;;  %v1443_v52 = vadd.f32 %v1437_v16, %v1435_v43 }
 0xe50   :  { %v3262_v30 = vpop.f32.mrf.mxu1 }
 0xe51   :  { %v1439_v27 = vmul.f32 %v3560_v28, %v3262_v30  ;;  %v1442_v49 = vadd.f32 %v1436_v24, %v1434_v37  ;;  %v4082_v37 = vld [vmem:[#allocation5 + $0xf0] sm:$0xff] }
 0xe52   :  { %v1415_v20 = vpop.f32.mrf.mxu1 }
 0xe53   :  { %v1438_v23 = vmul.f32 %v3558_v41, %v1415_v20  ;;  %v1445_v55 = vadd.f32 %v1443_v52, %v1439_v27  ;;  %v4076_v20 = vld [vmem:[#allocation5 + $0x100] sm:$0xff]  ;;  %v4086_v41 = vld [vmem:[#allocation5 + $0xe8] sm:$0xff]  ;;  %v4095_v52 = vrot.slane %v3943_v15, %v717_v62 }
 0xe54   :  { %v3265_v47 = vpop.f32.mrf.mxu1  ;;  %3277 = vmatprep.subr.mxu1 %v4076_v20  ;;  %v4108_v62 = vld [vmem:[#allocation5 + $0x140] sm:$0xff] }
 0xe55   :  { %v1441_v53 = vmul.f32 %v3561_v44, %v3265_v47  ;;  %v1444_v50 = vadd.f32 %v1442_v49, %v1438_v23  ;;  %3278 = vmatpush3.msra.mxu1 %v4076_v20  ;;  %3288 = vmatprep.subr.mxu0 %v4108_v62 }
 0xe56   :  { %v1425_v34 = vpop.f32.mrf.mxu1  ;;  %3279 = vmatprep.subr.mxu1 %v4078_v33 }
 0xe57   :  { %v1440_v54 = vmul.f32 %v3562_v36, %v1425_v34  ;;  %v1447_v59 = vadd.f32 %v1445_v55, %v1441_v53  ;;  %3280 = vmatpush3.msra.mxu1 %v4078_v33  ;;  %v4101_v36 = vrot.slane %v3943_v15, %v723_v4  ;;  %v4116_v4 = vld [vmem:[#allocation5 + $0x130] sm:$0xff] }
 0xe58   :  { %3281 = vmatprep.subr.mxu1 %v4082_v37 }
 0xe59   :  { %v1446_v56 = vadd.f32 %v1444_v50, %v1440_v54  ;;  %3282 = vmatpush3.msra.mxu1 %v4082_v37 }
 0xe5a   :  { %3283 = vmatprep.subr.mxu1 %v4086_v41 }
 0xe5b   :  { %3274 = vmatprep.mubr.msk.f32.mxu0 %vm90_vm0, %v1446_v56  ;;  %3284 = vmatpush3.msra.mxu1 %v4086_v41 }
 0xe5c   :  { %3275 = vmatmul.mubr.msk.f32.vlgmr.msra.gmra.mxu0 %vm90_vm0, %v1447_v59  ;;  %v4112_v59 = vld [vmem:[#allocation5 + $0x138] sm:$0xff] }
 0xe5d   :  { %3289 = vmatpush3.msra.mxu0 %v4108_v62 }
 0xe5e   :  { %3290 = vmatprep.subr.mxu0 %v4112_v59 }
 0xe5f   :  { %3291 = vmatpush3.msra.mxu0 %v4112_v59 }
 0xe60   :  { %3292 = vmatprep.subr.mxu0 %v4116_v4 }
 0xe61   :  { %3293 = vmatpush3.msra.mxu0 %v4116_v4 }
 0xf1c   :  { %v3276_v57 = vpop.f32.mrf.mxu0 }
 0xf1d   :  { %v1530_v58 = vadd.f32 %v3276_v57, %v3929_v21  ;;  %v4120_v57 = vld [vmem:[#allocation5 + $0x128] sm:$0xff] }
 0xf1e   :  { %v1520_v63 = vpop.f32.mrf.mxu0  ;;  %3294 = vmatprep.subr.mxu0 %v4120_v57 }
 0xf1f   :  { %v4062_v61 = vadd.f32 %v4058_v60, %v1530_v58  ;;  %v1529_v1 = vadd.f32 %v1520_v63, %v3933_v29  ;;  %3295 = vmatpush3.msra.mxu0 %v4120_v57  ;;  %v4124_v58 = vld [vmem:[#allocation5 + $0x120] sm:$0xff]  ;;  %v4128_v63 = vld [vmem:[#allocation5 + $0x118] sm:$0xff] }
 0xf20   :  { %3296 = vmatprep.subr.mxu0 %v4124_v58 }
 0xf21   :  { %v4066_v8 = vadd.f32 %v4058_v60, %v1529_v1  ;;  %v1540_v51 = vsel %vm90_vm0, %v4062_v61, 0.0  ;;  %3297 = vmatpush3.msra.mxu0 %v4124_v58  ;;  %v4131_v1 = vld [vmem:[#allocation5 + $0x110] sm:$0xff] }
 0xf22   :  { %1541 = vadd.xlane.f32.xlu0 %v1540_v51  ;;  %3298 = vmatprep.subr.mxu0 %v4128_v63  ;;  %v4134_v51 = vld [vmem:[#allocation5 + $0x108] sm:$0xff] }
 0xf23   :  { %v1537_v5 = vsel %vm90_vm0, %v4066_v8, 0.0  ;;  %3299 = vmatpush3.msra.mxu0 %v4128_v63 }
 0xf24   :  { %1538 = vadd.xlane.f32.xlu1 %v1537_v5  ;;  %3300 = vmatprep.subr.mxu0 %v4131_v1  ;;  %v4142_v5 = vrot.slane %v3943_v15, %v3911_v39 }
 0xf25   :  { %3301 = vmatpush3.msra.mxu0 %v4131_v1 }
 0xf26   :  { %3302 = vmatprep.subr.mxu0 %v4134_v51 }
 0xf27   :  { %3303 = vmatpush3.msra.mxu0 %v4134_v51 }
 0xfab   :  { %v1542_v19 = vpop.xlane.xlu0 %1541 }
 0xfac   :  { %v1544_v9 = vmul.f32 0.03125, %v1542_v19 }
 0xfad   :  { %v1539_v21 = vpop.xlane.xlu1 %1538 }
 0xfae   :  { %v1546_v17 = vsub.f32 %v4062_v61, %v1544_v9  ;;  %v1543_v30 = vmul.f32 0.03125, %v1539_v21 }
 0xfb0   :  { %v1545_v12 = vsub.f32 %v4066_v8, %v1543_v30  ;;  %v1548_v29 = vmul.f32 %v1546_v17, %v1546_v17 }
 0xfb2   :  { %v1552_v24 = vsel %vm90_vm0, %v1548_v29, 0.0  ;;  %v1547_v6 = vmul.f32 %v1545_v12, %v1545_v12 }
 0xfb3   :  { %1553 = vadd.xlane.f32.xlu1 %v1552_v24 }
 0xfb4   :  { %v1549_v16 = vsel %vm90_vm0, %v1547_v6, 0.0 }
 0xfb5   :  { %1550 = vadd.xlane.f32.xlu0 %v1549_v16 }
0x103c   :  { %v1554_v23 = vpop.xlane.xlu1 %1553 }
0x103d   :  { %v1556_v42 = vmul.f32 0.03125, %v1554_v23 }
0x103e   :  { %v1551_v43 = vpop.xlane.xlu0 %1550 }
0x103f   :  { %v1558_v28 = vadd.f32 1e-05, %v1556_v42  ;;  %v1555_v27 = vmul.f32 0.03125, %v1551_v43 }
0x1041   :  { %3521 = vrsqrt.f32 %v1558_v28  ;;  %v1557_v47 = vadd.f32 1e-05, %v1555_v27 }
0x1043   :  { %3523 = vrsqrt.f32 %v1557_v47 }
0x104e   :  { %v3522_v49 = vpop.eup %3521 }
0x104f   :  { %v1562_v44 = vmul.f32 %v3522_v49, %v1546_v17 }
0x1050   :  { %v3524_v53 = vpop.eup %3523 }
0x1051   :  { %v1561_v34 = vmul.f32 %v3524_v53, %v1545_v12  ;;  %v1568_v50 = vmul.f32 %v4095_v52, %v1562_v44 }
0x1053   :  { %v1567_v54 = vmul.f32 %v4095_v52, %v1561_v34  ;;  %v1574_v56 = vadd.f32 %v4101_v36, %v1568_v50 }
0x1055   :  { %v1573_v55 = vadd.f32 %v4101_v36, %v1567_v54 }
0x1057   :  { %3285 = vmatprep.mubr.msk.f32.mxu1 %vm90_vm0, %v1573_v55  ;;  %v4151_v55 = vrot.slane %v3943_v15, %v916_v13 }
0x1058   :  { %3286 = vmatmul.mubr.msk.f32.vlgmr.msra.gmra.mxu1 %vm90_vm0, %v1574_v56 }
0x1118   :  { %v3287_v19 = vpop.f32.mrf.mxu1 }
0x1119   :  { %v1657_v9 = vadd.f32 %v3287_v19, %v4142_v5 }
0x111a   :  { %v1651_v21 = vpop.f32.mrf.mxu1 }
0x111b   :  { %v1661_v17 = vmul.f32 %v1657_v9, %v1657_v9  ;;  %v1652_v30 = vadd.f32 %v1651_v21, %v4142_v5 }
0x111d   :  { %v1663_v12 = vmul.f32 %v1661_v17, %v1657_v9  ;;  %v1660_v29 = vmul.f32 %v1652_v30, %v1652_v30 }
0x111f   :  { %v1665_v24 = vmul.f32 0.044715, %v1663_v12  ;;  %v1662_v6 = vmul.f32 %v1660_v29, %v1652_v30 }
0x1121   :  { %v1667_v16 = vadd.f32 %v1665_v24, %v1657_v9  ;;  %v1664_v23 = vmul.f32 0.044715, %v1662_v6 }
0x1123   :  { %v1669_v42 = vmul.f32 0.7978846, %v1667_v16  ;;  %v1666_v43 = vadd.f32 %v1664_v23, %v1652_v30 }
0x1125   :  { %3525 = vtanh.f32 %v1669_v42  ;;  %v1668_v28 = vmul.f32 0.7978846, %v1666_v43 }
0x1127   :  { %3527 = vtanh.f32 %v1668_v28 }
0x1132   :  { %v3526_v27 = vpop.eup %3525 }
0x1133   :  { %v1673_v47 = vadd.f32 1.0, %v3526_v27 }
0x1134   :  { %v3528_v49 = vpop.eup %3527 }
0x1135   :  { %v1672_v44 = vadd.f32 1.0, %v3528_v49  ;;  %v1675_v53 = vmul.f32 0.5, %v1673_v47 }
0x1137   :  { %v1674_v34 = vmul.f32 0.5, %v1672_v44  ;;  %v1677_v54 = vmul.f32 %v1675_v53, %v1657_v9  ;;  %v4161_v53 = vld [vmem:[#allocation5 + $0x150] sm:$0xff] }
0x1139   :  { %v1676_v50 = vmul.f32 %v1674_v34, %v1652_v30  ;;  %v4165_v34 = vrot.slane %v4161_v53, %v3747_v45 }
0x113b   :  { %3304 = vmatprep.mubr.msk.f32.mxu0 %vm830_vm2, %v1676_v50 }
0x113c   :  { %3305 = vmatmul.mubr.msk.f32.vlgmr.msra.gmra.mxu0 %vm830_vm2, %v1677_v54 }
0x11fc   :  { %v3306_v56 = vpop.f32.mrf.mxu0 }
0x11fd   :  { %v1760_v19 = vadd.f32 %v3306_v56, %v4062_v61  ;;  %v4169_v56 = vrot.slane %v4161_v53, %v3911_v39 }
0x11fe   :  { %v1750_v21 = vpop.f32.mrf.mxu0 }
0x11ff   :  { %v1759_v17 = vadd.f32 %v1750_v21, %v4066_v8  ;;  %v1766_v12 = vadd.f32 %v4151_v55, %v1760_v19 }
0x1201   :  { %v1770_v30 = vsel %vm90_vm0, %v1766_v12, 0.0  ;;  %v1765_v9 = vadd.f32 %v4151_v55, %v1759_v17 }
0x1202   :  { %1771 = vadd.xlane.f32.xlu1 %v1770_v30 }
0x1203   :  { %v1767_v29 = vsel %vm90_vm0, %v1765_v9, 0.0 }
0x1204   :  { %1768 = vadd.xlane.f32.xlu0 %v1767_v29 }
0x128b   :  { %v1772_v31 = vpop.xlane.xlu1 %1771 }
0x128c   :  { %v1774_v24 = vmul.f32 0.03125, %v1772_v31 }
0x128d   :  { %v1769_v13 = vpop.xlane.xlu0 %1768 }
0x128e   :  { %v1776_v15 = vsub.f32 %v1766_v12, %v1774_v24  ;;  %v1773_v6 = vmul.f32 0.03125, %v1769_v13 }
0x1290   :  { %v1775_v16 = vsub.f32 %v1765_v9, %v1773_v6  ;;  %v1778_v61 = vmul.f32 %v1776_v15, %v1776_v15 }
0x1292   :  { %v1782_v23 = vsel %vm90_vm0, %v1778_v61, 0.0  ;;  %v1777_v8 = vmul.f32 %v1775_v16, %v1775_v16  ;;  %v3681_v61 = vmov 0.0  }
0x1293   :  { %1783 = vadd.xlane.f32.xlu1 %v1782_v23  ;;  %3307 = vmatprep.subr.mxu1 %v3681_v61  ;;  %v3563_v23 = vld [vmem:[#allocation5 + $0x18] sm:$0xff] }
0x1294   :  { %v1779_v42 = vsel %vm90_vm0, %v1777_v8, 0.0  ;;  %3328 = vmatprep.subr.mxu0 %v3681_v61  ;;  %3308 = vmatpush3.msra.mxu1 %v3563_v23  ;;  %v3564_v8 = vld [vmem:[#allocation5 + $0x38] sm:$0xff] }
0x1295   :  { %1780 = vadd.xlane.f32.xlu0 %v1779_v42  ;;  %3329 = vmatpush3.msra.mxu0 %v3564_v8  ;;  %v3565_v42 = vld [vmem:[#allocation5 + $0x10] sm:$0xff] }
0x1296   :  { %3309 = vmatprep.subr.mxu1 %v3681_v61  ;;  %3315 = vmatprep.mubr.msk.f32.mxu1 %vm3682_vm5, %v3681_v61 }
0x1297   :  { %3310 = vmatpush3.msra.mxu1 %v3565_v42  ;;  %3330 = vmatprep.subr.mxu0 %v3681_v61 }
0x1298   :  { %3311 = vmatprep.subr.mxu1 %v3681_v61  ;;  %3336 = vmatprep.mubr.msk.f32.mxu0 %vm3682_vm5, %v3681_v61 }
0x131c   :  { %v1784_v43 = vpop.xlane.xlu1 %1783 }
0x131d   :  { %v1786_v28 = vmul.f32 0.03125, %v1784_v43  ;;  %v3566_v43 = vld [vmem:[#allocation5 + $0x30] sm:$0xff] }
0x131e   :  { %v1781_v27 = vpop.xlane.xlu0 %1780  ;;  %3331 = vmatpush3.msra.mxu0 %v3566_v43 }
0x131f   :  { %v1788_v47 = vadd.f32 1e-05, %v1786_v28  ;;  %v1785_v49 = vmul.f32 0.03125, %v1781_v27  ;;  %v3567_v28 = vld [vmem:[#allocation5 + $0x8] sm:$0xff]  ;;  %3332 = vmatprep.subr.mxu0 %v3681_v61 }
0x1320   :  { %3312 = vmatpush3.msra.mxu1 %v3567_v28  ;;  %v3568_v27 = vld [vmem:[#allocation5 + $0x28] sm:$0xff] }
0x1321   :  { %3529 = vrsqrt.f32 %v1788_v47  ;;  %v1787_v44 = vadd.f32 1e-05, %v1785_v49  ;;  %3313 = vmatprep.subr.mxu1 %v3681_v61  ;;  %3333 = vmatpush3.msra.mxu0 %v3568_v27  ;;  %v3569_v47 = vld [vmem:[#allocation5] sm:$0xff] }
0x1322   :  { %3314 = vmatpush3.msra.mxu1 %v3569_v47  ;;  %3334 = vmatprep.subr.mxu0 %v3681_v61  ;;  %v3570_v49 = vld [vmem:[#allocation5 + $0x20] sm:$0xff] }
0x1323   :  { %3531 = vrsqrt.f32 %v1787_v44  ;;  %3318 = vmatprep.subr.mxu1 %v3681_v61  ;;  %3335 = vmatpush3.msra.mxu0 %v3570_v49 }
0x1324   :  { %3350 = vmatprep.subr.mxu0 %v3681_v61 }
0x132e   :  { %v3530_v50 = vpop.eup %3529 }
0x132f   :  { %v1792_v54 = vmul.f32 %v3530_v50, %v1776_v15 }
0x1330   :  { %v3532_v19 = vpop.eup %3531 }
0x1331   :  { %v1791_v21 = vmul.f32 %v3532_v19, %v1775_v16  ;;  %v1798_v17 = vmul.f32 %v4165_v34, %v1792_v54  ;;  %v2881_v19 = vrot.slane %v4161_v53, %v3870_v18 }
0x1333   :  { %v1797_v12 = vmul.f32 %v4165_v34, %v1791_v21  ;;  %v1804_v30 = vadd.f32 %v4169_v56, %v1798_v17 }
0x1335   :  { %v1803_v9 = vadd.f32 %v4169_v56, %v1797_v12  ;;  %v1809_v45 = vrot.slane %v1804_v30, 6  ;;  %v2886_v12 = vrot.slane %v4161_v53, %v3726_v32 }
0x1337   :  { %v1806_v29 = vrot.slane %v1803_v9, 7 }
0x1339   :  { %v4175_v31 = vsel %vm1811_vm3, %v1806_v29, %v1809_v45 }
0x133a   :  { %v1814_v39 = vsel %vm1813_vm4, %v4175_v31, 0.0 }
0x133b   :  { %1815 = vadd.xlane.f32.xlu0 %v1814_v39 }
0x13c4   :  { %v1816_v24 = vpop.xlane.xlu0 %1815 }
0x13c5   :  { %v1817_v13 = vmul.f32 0.03125, %v1816_v24 }
0x13c7   :  { %v1818_v15 = vsub.f32 %v4175_v31, %v1817_v13 }
0x13c9   :  { %v1819_v6 = vmul.f32 %v1818_v15, %v1818_v15 }
0x13cb   :  { %v1820_v16 = vsel %vm1813_vm4, %v1819_v6, 0.0 }
0x13cc   :  { %1821 = vadd.xlane.f32.xlu1 %v1820_v16 }
0x1455   :  { %v1822_v44 = vpop.xlane.xlu1 %1821 }
0x1456   :  { %v1823_v50 = vmul.f32 0.03125, %v1822_v44 }
0x1458   :  { %v1824_v54 = vadd.f32 1e-05, %v1823_v50 }
0x145a   :  { %3533 = vrsqrt.f32 %v1824_v54 }
0x1467   :  { %v3534_v21 = vpop.eup %3533 }
0x1468   :  { %v1826_v17 = vmul.f32 %v3534_v21, %v1818_v15  ;;  %v4209_v15 = vld [vmem:[#allocation5 + $0x1a8] sm:$0xff]  ;;  %v3571_v21 = vld [vmem:[#allocation5 + $0x58] sm:$0xff] }
0x146a   :  { %v1827_v30 = vmul.f32 %v1826_v17, %v3733_v35  ;;  %v2882_v9 = vmul.f32 %v2881_v19, %v1826_v17  ;;  %v3572_v17 = vld [vmem:[#allocation5 + $0x50] sm:$0xff] }
0x146c   :  { %v1828_v29 = vadd.f32 %v1827_v30, %v3738_v38  ;;  %v2887_v45 = vadd.f32 %v2886_v12, %v2882_v9  ;;  %v3573_v12 = vld [vmem:[#allocation5 + $0x48] sm:$0xff]  ;;  %v3574_v30 = vld [vmem:[#allocation5 + $0x40] sm:$0xff] }
0x146e   :  { %3316 = vmatmul.mubr.msk.f32.vlgmr.msra.gmra.mxu1 %vm90_vm0, %v1828_v29  ;;  %2888 = vst.msk [vmem:[#allocation7] sm:$0x3] %vm1813_vm4, %v2887_v45 }
0x146f   :  { %3320 = vmatprep.mubr.msk.f32.mxu1 %vm3682_vm5, %v3681_v61 }
0x152e   :  { %v1898_v39 = vpop.f32.mrf.mxu1 }
0x152f   :  { %v1899_v18 = vadd.f32 %v1898_v39, %v3751_v46 }
0x1530   :  { %v3317_v24 = vpop.f32.mrf.mxu1 }
0x1531   :  { %1916 = vrot.lane.b32.xlu0 %v1899_v18, %s3679_s0  ;;  %v1903_v32 = vrot.slane %v1899_v18, 6  ;;  %v1905_v35 = vrot.slane %v1899_v18, 4  ;;  %v1907_v13 = vrot.slane %v1899_v18, 2 }
0x1533   :  { %v1910_v53 = vsel %vm1909_vm6, %v1899_v18, %v1903_v32 }
0x1534   :  { %v1912_v38 = vsel %vm1911_vm7, %v1910_v53, %v1905_v35 }
0x1535   :  { %v1914_v6 = vsel %vm1913_vm8, %v1912_v38, %v1907_v13  ;;  %v3575_v38 = vld [vmem:[#allocation5 + $0x98] sm:$0xff]  ;;  %v3576_v13 = vld [vmem:[#allocation5 + $0x90] sm:$0xff] }
0x1536   :  { %v1915_v46 = vmul.f32 %v1914_v6, %v4209_v15  ;;  %v3577_v6 = vld [vmem:[#allocation5 + $0x88] sm:$0xff] }
0x15a3   :  { %v1917_v16 = vpop.permute.xlu0 %1916 }
0x15a4   :  { %3319 = vmatpush3.xpose.msk.msra.mxu1 %vm90_vm0, %v1917_v16  ;;  %v3578_v16 = vld [vmem:[#allocation5 + $0x80] sm:$0xff] }
0x15a5   :  { %3323 = vmatprep.subr.mxu1 %v3681_v61 }
0x15a7   :  { %3321 = vmatmul.mubr.msk.f32.vlgmr.msra.gmra.mxu1 %vm90_vm0, %v1915_v46  ;;  %v3579_v46 = vld [vmem:[#allocation5 + $0x78] sm:$0xff] }
0x15a8   :  { %3325 = vmatprep.mubr.msk.f32.mxu1 %vm3682_vm5, %v3681_v61 }
0x1667   :  { %v1989_v23 = vpop.f32.mrf.mxu1 }
0x1668   :  { %v1994_v8 = vsel %vm1993_vm9, %v1989_v23, -inf }
0x1669   :  { %1995 = vmax.xlane.f32.xlu1 %v1994_v8  ;;  %v3322_v42 = vpop.f32.mrf.mxu1  ;;  %v3581_v8 = vld [vmem:[#allocation5 + $0x68] sm:$0xff] }
0x166a   :  { %v3582_v42 = vld [vmem:[#allocation5 + $0x60] sm:$0xff] }
0x16f2   :  { %v1996_v43 = vpop.xlane.xlu1 %1995 }
0x16f3   :  { %v1997_v28 = vsub.f32 %v1989_v23, %v1996_v43  ;;  %v3580_v23 = vld [vmem:[#allocation5 + $0x70] sm:$0xff] }
0x16f5   :  { %v1998_v27 = vmul.f32 1.442695, %v1997_v28 }
0x16f7   :  { %3535 = vpow2.f32 %v1998_v27 }
0x1704   :  { %v3536_v47 = vpop.eup %3535 }
0x1705   :  { %v2000_v49 = vsel %vm1993_vm9, %v3536_v47, 0.0 }
0x1706   :  { %2001 = vadd.xlane.f32.xlu1 %v2000_v49 }
0x1717   :  { %2005 = vrot.lane.b32.xlu1 %v1899_v18, %s3680_s1 }
0x178f   :  { %v2002_v44 = vpop.xlane.xlu1 %2001 }
0x1790   :  { %3537 = vrcp.f32 %v2002_v44 }
0x1793   :  { %v2006_v50 = vpop.permute.xlu1 %2005 }
0x1794   :  { %3324 = vmatpush3.msk.msra.mxu1 %vm1909_vm6, %v2006_v50 }
0x1795   :  { %3339 = vmatprep.subr.mxu1 %v3681_v61 }
0x179d   :  { %v3538_v54 = vpop.eup %3537 }
0x179e   :  { %v2004_v19 = vmul.f32 %v3538_v54, %v3536_v47 }
0x17a0   :  { %3326 = vmatmul.mubr.msk.f32.vlgmr.msra.gmra.mxu1 %vm1993_vm9, %v2004_v19 }
0x17a1   :  { %3340 = vmatpush3.msra.mxu1 %v3571_v21  ;;  %3347 = vmatprep.mubr.msk.f32.mxu1 %vm3682_vm5, %v3681_v61 }
0x17a2   :  { %3341 = vmatprep.subr.mxu1 %v3681_v61 }
0x17a3   :  { %3342 = vmatpush3.msra.mxu1 %v3572_v17 }
0x17a4   :  { %3343 = vmatprep.subr.mxu1 %v3681_v61 }
0x17a5   :  { %3344 = vmatpush3.msra.mxu1 %v3573_v12 }
0x17a6   :  { %3345 = vmatprep.subr.mxu1 %v3681_v61 }
0x17a7   :  { %3346 = vmatpush3.msra.mxu1 %v3574_v30 }
0x17a8   :  { %3369 = vmatprep.subr.mxu1 %v3681_v61 }
0x1860   :  { %v2078_v9 = vpop.f32.mrf.mxu1 }
0x1861   :  { %v2082_v29 = vmul.f32 %v2078_v9, %v4209_v15 }
0x1862   :  { %v3327_v45 = vpop.f32.mrf.mxu1 }
0x1863   :  { %v2084_v39 = vrot.slane %v2082_v29, 2  ;;  %v2087_v24 = vrot.slane %v2082_v29, 4  ;;  %v2090_v35 = vrot.slane %v2082_v29, 6  ;;  %v3583_v45 = vld [vmem:[#allocation5 + $0xc0] sm:$0xff] }
0x1865   :  { %v2086_v18 = vadd.f32 %v2084_v39, %v2082_v29  ;;  %v3584_v39 = vld [vmem:[#allocation5 + $0xb8] sm:$0xff] }
0x1867   :  { %v2089_v32 = vadd.f32 %v2087_v24, %v2086_v18  ;;  %v3585_v18 = vld [vmem:[#allocation5 + $0xb0] sm:$0xff] }
0x1869   :  { %v2092_v53 = vadd.f32 %v2090_v35, %v2089_v32 }
0x186b   :  { %3337 = vmatmul.mubr.msk.f32.vlgmr.msra.gmra.mxu0 %vm90_vm0, %v2092_v53 }
0x186c   :  { %3351 = vmatpush3.msra.mxu0 %v3575_v38  ;;  %3366 = vmatprep.mubr.msk.f32.mxu0 %vm3682_vm5, %v3681_v61 }
0x186d   :  { %3352 = vmatprep.subr.mxu0 %v3681_v61 }
0x186e   :  { %3353 = vmatpush3.msra.mxu0 %v3576_v13 }
0x186f   :  { %3354 = vmatprep.subr.mxu0 %v3681_v61 }
0x1870   :  { %3355 = vmatpush3.msra.mxu0 %v3577_v6 }
0x1871   :  { %3356 = vmatprep.subr.mxu0 %v3681_v61 }
0x1872   :  { %3357 = vmatpush3.msra.mxu0 %v3578_v16 }
0x1873   :  { %3358 = vmatprep.subr.mxu0 %v3681_v61 }
0x1874   :  { %3359 = vmatpush3.msra.mxu0 %v3579_v46 }
0x1875   :  { %3360 = vmatprep.subr.mxu0 %v3681_v61 }
0x1876   :  { %3361 = vmatpush3.msra.mxu0 %v3580_v23 }
0x1877   :  { %3362 = vmatprep.subr.mxu0 %v3681_v61 }
0x1878   :  { %3363 = vmatpush3.msra.mxu0 %v3581_v8 }
0x1879   :  { %3364 = vmatprep.subr.mxu0 %v3681_v61 }
0x187a   :  { %3365 = vmatpush3.msra.mxu0 %v3582_v42 }
0x187b   :  { %3390 = vmatprep.subr.mxu0 %v3681_v61 }
0x192b   :  { %v2162_v43 = vpop.f32.mrf.mxu0 }
0x192c   :  { %v2166_v28 = vadd.f32 %v2162_v43, %v4175_v31 }
0x192d   :  { %v3338_v27 = vpop.f32.mrf.mxu0 }
0x192e   :  { %v2167_v47 = vadd.f32 %v2166_v28, %v3874_v10 }
0x1930   :  { %v2168_v49 = vsel %vm1813_vm4, %v2167_v47, 0.0 }
0x1931   :  { %2169 = vadd.xlane.f32.xlu0 %v2168_v49 }
0x19ba   :  { %v2170_v44 = vpop.xlane.xlu0 %2169 }
0x19bb   :  { %v2171_v50 = vmul.f32 0.03125, %v2170_v44 }
0x19bd   :  { %v2172_v54 = vsub.f32 %v2167_v47, %v2171_v50 }
0x19bf   :  { %v2173_v19 = vmul.f32 %v2172_v54, %v2172_v54 }
0x19c1   :  { %v2174_v21 = vsel %vm1813_vm4, %v2173_v19, 0.0 }
0x19c2   :  { %2175 = vadd.xlane.f32.xlu1 %v2174_v21 }
0x1a4b   :  { %v2176_v17 = vpop.xlane.xlu1 %2175 }
0x1a4c   :  { %v2177_v12 = vmul.f32 0.03125, %v2176_v17 }
0x1a4e   :  { %v2178_v30 = vadd.f32 1e-05, %v2177_v12 }
0x1a50   :  { %3539 = vrsqrt.f32 %v2178_v30 }
0x1a5d   :  { %v3540_v9 = vpop.eup %3539 }
0x1a5e   :  { %v2180_v29 = vmul.f32 %v3540_v9, %v2172_v54 }
0x1a60   :  { %v2181_v31 = vmul.f32 %v2180_v29, %v3896_v2  ;;  %v3586_v2 = vld [vmem:[#allocation5 + $0xa8] sm:$0xff] }
0x1a62   :  { %v2182_v10 = vadd.f32 %v2181_v31, %v3903_v14 }
0x1a64   :  { %3348 = vmatmul.mubr.msk.f32.vlgmr.msra.gmra.mxu1 %vm90_vm0, %v2182_v10 }
0x1a65   :  { %3370 = vmatpush3.msra.mxu1 %v3583_v45  ;;  %3377 = vmatprep.mubr.msk.f32.mxu1 %vm3682_vm5, %v3681_v61 }
0x1a66   :  { %3371 = vmatprep.subr.mxu1 %v3681_v61 }
0x1a67   :  { %3372 = vmatpush3.msra.mxu1 %v3584_v39 }
0x1a68   :  { %3373 = vmatprep.subr.mxu1 %v3681_v61 }
0x1a69   :  { %3374 = vmatpush3.msra.mxu1 %v3585_v18 }
0x1a6a   :  { %3375 = vmatprep.subr.mxu1 %v3681_v61 }
0x1a6b   :  { %3376 = vmatpush3.msra.mxu1 %v3586_v2 }
0x1a6c   :  { %3380 = vmatprep.subr.mxu1 %v3681_v61 }
0x1b24   :  { %v2252_v14 = vpop.f32.mrf.mxu1 }
0x1b25   :  { %v2253_v24 = vadd.f32 %v2252_v14, %v3915_v40 }
0x1b26   :  { %v3349_v32 = vpop.f32.mrf.mxu1 }
0x1b27   :  { %v2256_v35 = vmul.f32 %v2253_v24, %v2253_v24 }
0x1b29   :  { %v2257_v53 = vmul.f32 %v2256_v35, %v2253_v24 }
0x1b2b   :  { %v2258_v38 = vmul.f32 0.044715, %v2257_v53 }
0x1b2d   :  { %v2259_v13 = vadd.f32 %v2258_v38, %v2253_v24 }
0x1b2f   :  { %v2260_v6 = vmul.f32 0.7978846, %v2259_v13 }
0x1b31   :  { %3541 = vtanh.f32 %v2260_v6 }
0x1b3e   :  { %v3542_v16 = vpop.eup %3541 }
0x1b3f   :  { %v2262_v46 = vadd.f32 1.0, %v3542_v16 }
0x1b41   :  { %v2263_v23 = vmul.f32 0.5, %v2262_v46 }
0x1b43   :  { %v2264_v8 = vmul.f32 %v2263_v23, %v2253_v24 }
0x1b45   :  { %3367 = vmatmul.mubr.msk.f32.vlgmr.msra.gmra.mxu0 %vm830_vm2, %v2264_v8 }
0x1b46   :  { %3391 = vmatpush3.msra.mxu0 %v4038_v3  ;;  %3398 = vmatprep.mubr.msk.f32.mxu0 %vm3682_vm5, %v3681_v61 }
0x1b47   :  { %3392 = vmatprep.subr.mxu0 %v3681_v61 }
0x1b48   :  { %3393 = vmatpush3.msra.mxu0 %v4042_v0 }
0x1b49   :  { %3394 = vmatprep.subr.mxu0 %v3681_v61 }
0x1b4a   :  { %3395 = vmatpush3.msra.mxu0 %v4046_v11 }
0x1b4b   :  { %3396 = vmatprep.subr.mxu0 %v3681_v61 }
0x1b4c   :  { %3397 = vmatpush3.msra.mxu0 %v4050_v48 }
0x1b4d   :  { %3412 = vmatprep.subr.mxu0 %v3681_v61 }
0x1c05   :  { %v2334_v40 = vpop.f32.mrf.mxu0 }
0x1c06   :  { %v2338_v42 = vadd.f32 %v2334_v40, %v2167_v47 }
0x1c07   :  { %v3368_v3 = vpop.f32.mrf.mxu0 }
0x1c08   :  { %v4268_v43 = vadd.f32 %v2338_v42, %v3925_v26 }
0x1c0a   :  { %v2340_v28 = vsel %vm1813_vm4, %v4268_v43, 0.0 }
0x1c0b   :  { %2341 = vadd.xlane.f32.xlu0 %v2340_v28 }
0x1c94   :  { %v2342_v0 = vpop.xlane.xlu0 %2341 }
0x1c95   :  { %v2343_v27 = vmul.f32 0.03125, %v2342_v0 }
0x1c97   :  { %v2344_v11 = vsub.f32 %v4268_v43, %v2343_v27 }
0x1c99   :  { %v2345_v49 = vmul.f32 %v2344_v11, %v2344_v11 }
0x1c9b   :  { %v2346_v44 = vsel %vm1813_vm4, %v2345_v49, 0.0 }
0x1c9c   :  { %2347 = vadd.xlane.f32.xlu0 %v2346_v44 }
0x1d25   :  { %v2348_v48 = vpop.xlane.xlu0 %2347 }
0x1d26   :  { %v2349_v50 = vmul.f32 0.03125, %v2348_v48 }
0x1d28   :  { %v2350_v54 = vadd.f32 1e-05, %v2349_v50 }
0x1d2a   :  { %3543 = vrsqrt.f32 %v2350_v54 }
0x1d37   :  { %v3544_v47 = vpop.eup %3543 }
0x1d38   :  { %v2352_v19 = vmul.f32 %v3544_v47, %v2344_v11 }
0x1d3a   :  { %v2353_v26 = vmul.f32 %v2352_v19, %v3947_v22 }
0x1d3c   :  { %v2354_v21 = vadd.f32 %v2353_v26, %v3952_v7 }
0x1d3e   :  { %3378 = vmatmul.mubr.msk.f32.vlgmr.msra.gmra.mxu1 %vm90_vm0, %v2354_v21 }
0x1d3f   :  { %3382 = vmatprep.mubr.msk.f32.mxu1 %vm3682_vm5, %v3681_v61 }
0x1dfe   :  { %v2424_v17 = vpop.f32.mrf.mxu1 }
0x1dff   :  { %v2425_v12 = vadd.f32 %v2424_v17, %v3962_v25 }
0x1e00   :  { %v3379_v30 = vpop.f32.mrf.mxu1 }
0x1e01   :  { %2439 = vrot.lane.b32.xlu0 %v2425_v12, %s3679_s0  ;;  %v2429_v9 = vrot.slane %v2425_v12, 6  ;;  %v2431_v29 = vrot.slane %v2425_v12, 4  ;;  %v2433_v22 = vrot.slane %v2425_v12, 2 }
0x1e03   :  { %v2435_v31 = vsel %vm1909_vm6, %v2425_v12, %v2429_v9 }
0x1e04   :  { %v2436_v10 = vsel %vm1911_vm7, %v2435_v31, %v2431_v29 }
0x1e05   :  { %v2437_v7 = vsel %vm1913_vm8, %v2436_v10, %v2433_v22 }
0x1e06   :  { %v2438_v39 = vmul.f32 %v2437_v7, %v4209_v15 }
0x1e73   :  { %v2440_v45 = vpop.permute.xlu0 %2439 }
0x1e74   :  { %3381 = vmatpush3.xpose.msk.msra.mxu1 %vm90_vm0, %v2440_v45 }
0x1e75   :  { %3385 = vmatprep.subr.mxu1 %v3681_v61 }
0x1e77   :  { %3383 = vmatmul.mubr.msk.f32.vlgmr.msra.gmra.mxu1 %vm90_vm0, %v2438_v39 }
0x1e78   :  { %3387 = vmatprep.mubr.msk.f32.mxu1 %vm3682_vm5, %v3681_v61 }
0x1f37   :  { %v2512_v25 = vpop.f32.mrf.mxu1 }
0x1f38   :  { %v2516_v18 = vsel %vm1993_vm9, %v2512_v25, -inf }
0x1f39   :  { %2517 = vmax.xlane.f32.xlu1 %v2516_v18  ;;  %v3384_v2 = vpop.f32.mrf.mxu1 }
0x1fc2   :  { %v2518_v14 = vpop.xlane.xlu1 %2517 }
0x1fc3   :  { %v2519_v24 = vsub.f32 %v2512_v25, %v2518_v14 }
0x1fc5   :  { %v2520_v32 = vmul.f32 1.442695, %v2519_v24 }
0x1fc7   :  { %3545 = vpow2.f32 %v2520_v32 }
0x1fd4   :  { %v3546_v35 = vpop.eup %3545 }
0x1fd5   :  { %v2522_v53 = vsel %vm1993_vm9, %v3546_v35, 0.0 }
0x1fd6   :  { %2523 = vadd.xlane.f32.xlu1 %v2522_v53 }
0x1fe7   :  { %2527 = vrot.lane.b32.xlu1 %v2425_v12, %s3680_s1 }
0x205f   :  { %v2524_v38 = vpop.xlane.xlu1 %2523 }
0x2060   :  { %3547 = vrcp.f32 %v2524_v38 }
0x2063   :  { %v2528_v13 = vpop.permute.xlu1 %2527 }
0x2064   :  { %3386 = vmatpush3.msk.msra.mxu1 %vm1909_vm6, %v2528_v13 }
0x2065   :  { %3401 = vmatprep.subr.mxu1 %v3681_v61 }
0x206d   :  { %v3548_v6 = vpop.eup %3547 }
0x206e   :  { %v2526_v16 = vmul.f32 %v3548_v6, %v3546_v35 }
0x2070   :  { %3388 = vmatmul.mubr.msk.f32.vlgmr.msra.gmra.mxu1 %vm1993_vm9, %v2526_v16 }
0x2071   :  { %3402 = vmatpush3.msra.mxu1 %v4076_v20  ;;  %3409 = vmatprep.mubr.msk.f32.mxu1 %vm3682_vm5, %v3681_v61 }
0x2072   :  { %3403 = vmatprep.subr.mxu1 %v3681_v61 }
0x2073   :  { %3404 = vmatpush3.msra.mxu1 %v4078_v33 }
0x2074   :  { %3405 = vmatprep.subr.mxu1 %v3681_v61 }
0x2075   :  { %3406 = vmatpush3.msra.mxu1 %v4082_v37 }
0x2076   :  { %3407 = vmatprep.subr.mxu1 %v3681_v61 }
0x2077   :  { %3408 = vmatpush3.msra.mxu1 %v4086_v41 }
0x2130   :  { %v2600_v46 = vpop.f32.mrf.mxu1 }
0x2131   :  { %v2604_v23 = vmul.f32 %v2600_v46, %v4209_v15 }
0x2132   :  { %v3389_v8 = vpop.f32.mrf.mxu1 }
0x2133   :  { %v2606_v20 = vrot.slane %v2604_v23, 2  ;;  %v2609_v42 = vrot.slane %v2604_v23, 4  ;;  %v2612_v28 = vrot.slane %v2604_v23, 6 }
0x2135   :  { %v2608_v40 = vadd.f32 %v2606_v20, %v2604_v23 }
0x2137   :  { %v2611_v3 = vadd.f32 %v2609_v42, %v2608_v40 }
0x2139   :  { %v2614_v0 = vadd.f32 %v2612_v28, %v2611_v3 }
0x213b   :  { %3399 = vmatmul.mubr.msk.f32.vlgmr.msra.gmra.mxu0 %vm90_vm0, %v2614_v0 }
0x213c   :  { %3413 = vmatpush3.msra.mxu0 %v4108_v62  ;;  %3428 = vmatprep.mubr.msk.f32.mxu0 %vm3682_vm5, %v3681_v61 }
0x213d   :  { %3414 = vmatprep.subr.mxu0 %v3681_v61 }
0x213e   :  { %3415 = vmatpush3.msra.mxu0 %v4112_v59 }
0x213f   :  { %3416 = vmatprep.subr.mxu0 %v3681_v61 }
0x2140   :  { %3417 = vmatpush3.msra.mxu0 %v4116_v4 }
0x2141   :  { %3418 = vmatprep.subr.mxu0 %v3681_v61 }
0x2142   :  { %3419 = vmatpush3.msra.mxu0 %v4120_v57 }
0x2143   :  { %3420 = vmatprep.subr.mxu0 %v3681_v61 }
0x2144   :  { %3421 = vmatpush3.msra.mxu0 %v4124_v58 }
0x2145   :  { %3422 = vmatprep.subr.mxu0 %v3681_v61 }
0x2146   :  { %3423 = vmatpush3.msra.mxu0 %v4128_v63 }
0x2147   :  { %3424 = vmatprep.subr.mxu0 %v3681_v61 }
0x2148   :  { %3425 = vmatpush3.msra.mxu0 %v4131_v1 }
0x2149   :  { %3426 = vmatprep.subr.mxu0 %v3681_v61 }
0x214a   :  { %3427 = vmatpush3.msra.mxu0 %v4134_v51 }
0x21fb   :  { %v2684_v33 = vpop.f32.mrf.mxu0 }
0x21fc   :  { %v2688_v37 = vadd.f32 %v2684_v33, %v4268_v43 }
0x21fd   :  { %v3400_v41 = vpop.f32.mrf.mxu0 }
0x21fe   :  { %v2689_v62 = vadd.f32 %v2688_v37, %v4058_v60 }
0x2200   :  { %v2690_v59 = vsel %vm1813_vm4, %v2689_v62, 0.0 }
0x2201   :  { %2691 = vadd.xlane.f32.xlu0 %v2690_v59 }
0x228a   :  { %v2692_v4 = vpop.xlane.xlu0 %2691 }
0x228b   :  { %v2693_v57 = vmul.f32 0.03125, %v2692_v4 }
0x228d   :  { %v2694_v58 = vsub.f32 %v2689_v62, %v2693_v57 }
0x228f   :  { %v2695_v63 = vmul.f32 %v2694_v58, %v2694_v58 }
0x2291   :  { %v2696_v15 = vsel %vm1813_vm4, %v2695_v63, 0.0 }
0x2292   :  { %2697 = vadd.xlane.f32.xlu1 %v2696_v15 }
0x231b   :  { %v2698_v1 = vpop.xlane.xlu1 %2697 }
0x231c   :  { %v2699_v61 = vmul.f32 0.03125, %v2698_v1 }
0x231e   :  { %v2700_v27 = vadd.f32 1e-05, %v2699_v61 }
0x2320   :  { %3549 = vrsqrt.f32 %v2700_v27 }
0x232d   :  { %v3550_v51 = vpop.eup %3549 }
0x232e   :  { %v2702_v11 = vmul.f32 %v3550_v51, %v2694_v58 }
0x2330   :  { %v2703_v43 = vmul.f32 %v2702_v11, %v4095_v52 }
0x2332   :  { %v2704_v60 = vadd.f32 %v2703_v43, %v4101_v36 }
0x2334   :  { %3410 = vmatmul.mubr.msk.f32.vlgmr.msra.gmra.mxu1 %vm90_vm0, %v2704_v60 }
0x23f4   :  { %v2774_v49 = vpop.f32.mrf.mxu1 }
0x23f5   :  { %v2775_v44 = vadd.f32 %v2774_v49, %v4142_v5 }
0x23f6   :  { %v3411_v48 = vpop.f32.mrf.mxu1 }
0x23f7   :  { %v2778_v50 = vmul.f32 %v2775_v44, %v2775_v44 }
0x23f9   :  { %v2779_v54 = vmul.f32 %v2778_v50, %v2775_v44 }
0x23fb   :  { %v2780_v47 = vmul.f32 0.044715, %v2779_v54 }
0x23fd   :  { %v2781_v19 = vadd.f32 %v2780_v47, %v2775_v44 }
0x23ff   :  { %v2782_v26 = vmul.f32 0.7978846, %v2781_v19 }
0x2401   :  { %3551 = vtanh.f32 %v2782_v26 }
0x240e   :  { %v3552_v21 = vpop.eup %3551 }
0x240f   :  { %v2784_v17 = vadd.f32 1.0, %v3552_v21 }
0x2411   :  { %v2785_v12 = vmul.f32 0.5, %v2784_v17 }
0x2413   :  { %v2786_v30 = vmul.f32 %v2785_v12, %v2775_v44 }
0x2415   :  { %3429 = vmatmul.mubr.msk.f32.vlgmr.msra.gmra.mxu0 %vm830_vm2, %v2786_v30 }
0x24d5   :  { %v2856_v52 = vpop.f32.mrf.mxu0 }
0x24d6   :  { %v2860_v36 = vadd.f32 %v2856_v52, %v2689_v62 }
0x24d7   :  { %v3430_v9 = vpop.f32.mrf.mxu0 }
0x24d8   :  { %v2861_v29 = vadd.f32 %v2860_v36, %v4151_v55 }
0x24da   :  { %v2862_v5 = vsel %vm1813_vm4, %v2861_v29, 0.0 }
0x24db   :  { %2863 = vadd.xlane.f32.xlu0 %v2862_v5 }
0x2564   :  { %v2864_v31 = vpop.xlane.xlu0 %2863 }
0x2565   :  { %v2865_v10 = vmul.f32 0.03125, %v2864_v31 }
0x2567   :  { %v2866_v22 = vsub.f32 %v2861_v29, %v2865_v10 }
0x2569   :  { %v2867_v7 = vmul.f32 %v2866_v22, %v2866_v22 }
0x256b   :  { %v2868_v45 = vsel %vm1813_vm4, %v2867_v7, 0.0 }
0x256c   :  { %2869 = vadd.xlane.f32.xlu0 %v2868_v45 }
0x256d   :  { %3638 = shalt.err (!%p3635_p0)
}
0x256e   :  { %2898 = dma.vmem_to_hbm [thread:$0]  %s2896_s25, 32, %s4347_s2, [#allocation4]  }
0x256f   :  { %s3684_s29 = smov [#allocation8]  }
0x2570   :  { %s2905_s30 = sshll.u32 %s3684_s29, 4  ;;  %s2906_s30 = int_to_ptr.vmem [resolvable:$true] %s2905_s30 }
0x2571   :  { %s3647_s4 = scalar_lea.vmem %s2906_s30, 32  ;;  %p3652_p2 = scmp.lt.s32.totalorder %s2906_s30, %s2906_s30 }
0x2572   :  { %p3648_p1 = scmp.ne.s32.totalorder %s2906_s30, %s3647_s4  ;;  %p3653_p3 = scmp.lt.s32.totalorder %s3647_s4, %s3647_s4 }
0x2574   :  { %p3654_p4 = por %p3653_p3, %p3652_p2 }
0x2576   :  { %p3655_p5 = pnand %p3654_p4, %p3648_p1 }
0x25f5   :  { %v2870_v55 = vpop.xlane.xlu0 %2869 }
0x25f6   :  { %v2871_v39 = vmul.f32 0.03125, %v2870_v55 }
0x25f8   :  { %v2872_v25 = vadd.f32 1e-05, %v2871_v39 }
0x25fa   :  { %3553 = vrsqrt.f32 %v2872_v25 }
0x2607   :  { %v3554_v18 = vpop.eup %3553 }
0x2608   :  { %v2874_v2 = vmul.f32 %v3554_v18, %v2866_v22 }
0x260a   :  { %v2875_v14 = vmul.f32 %v2874_v2, %v4165_v34 }
0x260c   :  { %v2876_v24 = vadd.f32 %v2875_v14, %v4169_v56 }
0x260e   :  { %2877 = vst.msk [vmem:[#allocation8] sm:$0x3] %vm1813_vm4, %v2876_v24 }
0x260f   :  { %3658 = shalt.err (!%p3655_p5)
}
0x2610   :  { %2908 = dma.vmem_to_hbm [thread:$0]  %s2906_s30, 32, %s4348_s3, [#allocation9]  }
0x2611   :  { %3671 = dma.done.wait [#allocation4], 32  }
0x2612   :  { %3672 = vsyncadd [#allocation4], 4294967264 }
0x2613   :  { %3673 = dma.done.wait [#allocation9], 32  }
0x2614   :  { %3674 = vsyncadd [#allocation9], 4294967264 }
0x2615   :  { %2915 = vsyncpa [#allocation3], 1 }
0x2616   :  { %2916 = vsyncpa [#allocation6], 1 }
0x2617   :  { %2917 = vsyncpa [#allocation4], 1 }
0x2618   :  { %2918 = vsyncpa [#allocation9], 1 }

</bundles_post_ra>
